<compile_context>
chip_gen: v6e
topology: v6e:2x2x1
jax: 0.10.0
libtpu: 0.0.40
codegen_flags: <defaults>
</compile_context>

<pallas_src>
import functools

import jax
import jax.numpy as jnp
from jax.experimental import pallas as pl
from jax.experimental.pallas import tpu as pltpu

_EPS = 1e-12   # torch.nn.functional.normalize default eps (clamp_min)


# ---------------------------------------------------------------------------
# Small-N fast path: everything in one grid=(1,) kernel call.
# ---------------------------------------------------------------------------
def _gcal_fused_kernel(w_ref, a_ref, o_ref, *, num_channel, eps):
    # w_ref: (C,) softmax'ed channel weights in SMEM
    # a_ref: (C, N, N) full adjacency stack in VMEM
    # o_ref: (N, N) output
    acc = jnp.zeros(o_ref.shape, jnp.float32)
    for c in range(num_channel):                        # C is tiny -> static unroll
        a_c = a_ref[c]                                  # (N, N)
        # L1 norm over dim=1 (rows) == per-column sum of |.|
        l1 = jnp.sum(jnp.abs(a_c), axis=0, keepdims=True)            # (1, N)
        inv = pl.reciprocal(jnp.maximum(l1, eps), approx=False)      # per-column only
        acc = acc + a_c * (inv * w_ref[c])              # fused recip * channel weight
    o_ref[...] = acc


# ---------------------------------------------------------------------------
# Pass 1 (tiled path): per-column L1 norms, accumulated over row tiles.
# ---------------------------------------------------------------------------
def _l1_kernel(a_ref, l1_ref):
    # a_ref: (C, tile_m, tile_n), l1_ref: (C, 1, tile_n) accumulator
    @pl.when(pl.program_id(1) == 0)
    def _():
        l1_ref[...] = jnp.zeros_like(l1_ref)
    l1_ref[...] += jnp.sum(jnp.abs(a_ref[...]), axis=1, keepdims=True)


# ---------------------------------------------------------------------------
# Pass 2 (tiled path): weighted channel sum with precomputed per-column scales.
# ---------------------------------------------------------------------------
def _weighted_sum_kernel(scale_ref, a_ref, o_ref, *, num_channel):
    # scale_ref: (C, 1, tile_n) == softmax(w)[c] / max(l1[c, col], eps)
    # a_ref:     (C, tile_m, tile_n)
    # o_ref:     (tile_m, tile_n)
    acc = jnp.zeros(o_ref.shape, jnp.float32)
    for c in range(num_channel):
        acc = acc + a_ref[c] * scale_ref[c]             # (tm,tn) * (1,tn) broadcast
    o_ref[...] = acc


# ---------------------------------------------------------------------------
# Tiling / VMEM helpers
# ---------------------------------------------------------------------------
def _pick_tile(n, candidates, cap=None):
    for t in candidates:
        if cap is not None and t > cap:
            continue
        if t <= n and n % t == 0:
            return t
    return n      # full extent is always a legal block dim


def _choose_tiles(num_channel, n, adj_block_budget=4 << 20):
    # Lane dim first (biggest single lever: amortizes per-step overhead), then
    # cap the sublane dim so one adjacency input block stays inside the budget
    # (double-buffered by the pipeline).
    tile_n = _pick_tile(n, (1024, 512, 256, 128))
    max_m = max(adj_block_budget // (num_channel * tile_n * 4), 8)
    tile_m = _pick_tile(n, (1024, 512, 256, 128, 64, 32, 16, 8), cap=max_m)
    return tile_m, tile_n


def _vmem_limit(block_bytes):
    # double-buffered blocks, 2x headroom for in-kernel temporaries, +4 MiB slack;
    # with the 4 MiB adjacency-block budget this stays well under v7x's 64 MiB.
    return int(2 * block_bytes) * 2 + (4 << 20)


# ---------------------------------------------------------------------------
# Wrapper
# ---------------------------------------------------------------------------
def graph_channel_att(adj_stack, weight, *, tile_m=None, tile_n=None,
                      force_tiled=False, fused_bytes_limit=4 << 20):
    """adj_stack: (C, N, N); weight: (C, 1, 1)  ->  (N, N) float32."""
    C, N, N2 = adj_stack.shape
    assert N == N2, "adjacency matrices must be square"

    adj_stack = adj_stack.astype(jnp.float32)
    # Channel softmax hoisted out of the kernel (C is tiny).
    w_sm = jax.nn.softmax(weight.reshape(C).astype(jnp.float32))      # (C,)

    adj_bytes = C * N * N * 4
    if not force_tiled and adj_bytes <= fused_bytes_limit:
        # ---- small-N fast path: single block, single kernel call ----
        block_bytes = adj_bytes + N * N * 4
        return pl.pallas_call(
            functools.partial(_gcal_fused_kernel, num_channel=C, eps=_EPS),
            out_shape=jax.ShapeDtypeStruct((N, N), jnp.float32),
            grid_spec=pltpu.PrefetchScalarGridSpec(
                num_scalar_prefetch=0,
                grid=(1,),
                in_specs=[
                    pl.BlockSpec(memory_space=pltpu.MemorySpace.SMEM),   # softmaxed weights
                    pl.BlockSpec((C, N, N), lambda i: (0, 0, 0)),        # full adj stack
                ],
                out_specs=pl.BlockSpec((N, N), lambda i: (0, 0)),
            ),
            compiler_params=pltpu.CompilerParams(
                dimension_semantics=("arbitrary",),
                vmem_limit_bytes=_vmem_limit(block_bytes)),
            cost_estimate=pl.CostEstimate(
                flops=4 * C * N * N, transcendentals=0,
                bytes_accessed=(C + 1) * N * N * 4),
        )(w_sm, adj_stack)

    # ---- general path: two passes, both matrix axes tiled ----
    if tile_m is None or tile_n is None:
        auto_m, auto_n = _choose_tiles(C, N)
        tile_m = auto_m if tile_m is None else tile_m
        tile_n = auto_n if tile_n is None else tile_n
    assert N % tile_m == 0 and N % tile_n == 0, "tiles must divide N"
    n_row = N // tile_m
    n_col = N // tile_n

    adj_block_bytes = C * tile_m * tile_n * 4
    l1_block_bytes = C * 8 * tile_n * 4            # (C,1,tile_n) sublane-pads 1->8
    out_block_bytes = tile_m * tile_n * 4

    # Pass 1: per-column L1 norms over the FULL row axis. (Correctness: the
    # norm must be reduced over all row tiles before any normalization.)
    l1 = pl.pallas_call(
        _l1_kernel,
        out_shape=jax.ShapeDtypeStruct((C, 1, N), jnp.float32),
        grid_spec=pltpu.PrefetchScalarGridSpec(
            num_scalar_prefetch=0,
            grid=(n_col, n_row),                   # reduction (row) axis last
            in_specs=[pl.BlockSpec((C, tile_m, tile_n), lambda j, i: (0, i, j))],
            out_specs=pl.BlockSpec((C, 1, tile_n), lambda j, i: (0, 0, j)),
        ),
        compiler_params=pltpu.CompilerParams(
            dimension_semantics=("parallel", "arbitrary"),
            vmem_limit_bytes=_vmem_limit(adj_block_bytes + l1_block_bytes)),
        cost_estimate=pl.CostEstimate(
            flops=2 * C * N * N, transcendentals=0,
            bytes_accessed=C * N * N * 4 + C * N * 4),
    )(adj_stack)

    # Fold the softmax weight and the clamped reciprocal into one per-column
    # scale (tiny: C*N elements) so pass 2 is a pure multiply-add per element.
    scale = (w_sm[:, None, None] / jnp.maximum(l1, _EPS)).astype(jnp.float32)

    # Pass 2: weighted channel sum, tiled over both axes (megacore-shardable).
    return pl.pallas_call(
        functools.partial(_weighted_sum_kernel, num_channel=C),
        out_shape=jax.ShapeDtypeStruct((N, N), jnp.float32),
        grid_spec=pltpu.PrefetchScalarGridSpec(
            num_scalar_prefetch=0,
            grid=(n_row, n_col),
            in_specs=[
                pl.BlockSpec((C, 1, tile_n), lambda i, j: (0, 0, j)),       # scales
                pl.BlockSpec((C, tile_m, tile_n), lambda i, j: (0, i, j)),  # adj tile
            ],
            out_specs=pl.BlockSpec((tile_m, tile_n), lambda i, j: (i, j)),
        ),
        compiler_params=pltpu.CompilerParams(
            dimension_semantics=("parallel", "parallel"),
            vmem_limit_bytes=_vmem_limit(
                adj_block_bytes + l1_block_bytes + out_block_bytes)),
        cost_estimate=pl.CostEstimate(
            flops=2 * C * N * N, transcendentals=0,
            bytes_accessed=(C + 1) * N * N * 4 + C * N * 4),
    )(scale, adj_stack)


# ---------------------------------------------------------------------------
# Pure-JAX reference (mirrors the PyTorch module)
# ---------------------------------------------------------------------------
def _reference(adj_stack, weight):
    norm = jnp.sum(jnp.abs(adj_stack), axis=1, keepdims=True)        # (C, 1, N)
    normed = adj_stack / jnp.maximum(norm, 1e-12)
    w = jax.nn.softmax(weight, axis=0)                               # (C, 1, 1)
    return jnp.sum(normed * w, axis=0)


if __name__ == "__main__":
    num_channel = 4
    N = 256

    key = jax.random.PRNGKey(0)
    keys = jax.random.split(key, num_channel)
    # list of adjacency matrices (non-negative, like typical graph adjacencies)
    adj_list = [jnp.abs(jax.random.normal(k, (N, N), dtype=jnp.float32)) for k in keys]
    adj_stack = jnp.stack(adj_list)                                  # (C, N, N)

    # nn.init.constant_(self.weight, 0.1), shape (num_channel, 1, 1)
    weight = jnp.full((num_channel, 1, 1), 0.1, dtype=jnp.float32)

    ref = _reference(adj_stack, weight)

    # Small-N fast path (single fused kernel, grid=(1,)).
    out_fused = jax.block_until_ready(graph_channel_att(adj_stack, weight))
    assert out_fused.shape == (N, N)
    assert jnp.allclose(out_fused, ref, atol=1e-5, rtol=1e-5), "fused path mismatch"

    # Tiled two-pass path (forced, small tiles so both grids have multiple steps).
    out_tiled = jax.block_until_ready(
        graph_channel_att(adj_stack, weight, force_tiled=True, tile_m=128, tile_n=128))
    assert out_tiled.shape == (N, N)
    assert jnp.allclose(out_tiled, ref, atol=1e-5, rtol=1e-5), "tiled path mismatch"

    print("KERNEL_OK")
</pallas_src>

<mosaic_0001>
module attributes {stable_mosaic.version = 11 : i64} {
  func.func @_gcal_fused_kernel(%arg0: i32, %arg1: memref<4xf32, #tpu.memory_space<smem>>, %arg2: memref<4x256x256xf32, #tpu.memory_space<vmem>>, %arg3: memref<256x256xf32, #tpu.memory_space<vmem>>) attributes {dimension_semantics = [#tpu.dimension_semantics<arbitrary>], iteration_bounds = array<i64: 1>, scalar_prefetch = 0 : i64, scratch_operands = 0 : i64, tpu.core_type = #tpu.core_type<tc>, window_params = [{transform_indices = @transform_0, window_bounds = array<i64: 4>}, {pipeline_mode = #tpu.pipeline_mode<synchronous>, transform_indices = @transform_1, window_bounds = array<i64: 4, 256, 256>}, {pipeline_mode = #tpu.pipeline_mode<synchronous>, transform_indices = @transform_2, window_bounds = array<i64: 256, 256>}]} {
    %cst = arith.constant 0.000000e+00 : f32
    %0 = vector.broadcast %cst : f32 to vector<256x256xf32>
    %c0 = arith.constant 0 : index
    %c0_0 = arith.constant 0 : index
    %c0_1 = arith.constant 0 : index
    %1 = vector.load %arg2[%c0, %c0_0, %c0_1] : memref<4x256x256xf32, #tpu.memory_space<vmem>>, vector<1x256x256xf32>
    %2 = vector.shape_cast %1 : vector<1x256x256xf32> to vector<256x256xf32>
    %3 = math.absf %2 : vector<256x256xf32>
    %cst_2 = arith.constant dense<0.000000e+00> : vector<256xf32>
    %4 = vector.multi_reduction <add>, %3, %cst_2 [0] : vector<256x256xf32> to vector<256xf32>
    %5 = vector.shape_cast %4 : vector<256xf32> to vector<1x256xf32>
    %cst_3 = arith.constant 9.99999996E-13 : f32
    %6 = vector.broadcast %cst_3 : f32 to vector<1x256xf32>
    %7 = arith.maximumf %5, %6 : vector<1x256xf32>
    %8 = tpu.reciprocal %7 : vector<1x256xf32> -> vector<1x256xf32>
    %c0_4 = arith.constant 0 : index
    %9 = memref.load %arg1[%c0_4] : memref<4xf32, #tpu.memory_space<smem>>
    %10 = vector.broadcast %9 : f32 to vector<1x256xf32>
    %11 = arith.mulf %8, %10 : vector<1x256xf32>
    %12 = vector.broadcast %11 : vector<1x256xf32> to vector<256x256xf32>
    %13 = arith.mulf %2, %12 : vector<256x256xf32>
    %14 = arith.addf %0, %13 : vector<256x256xf32>
    %c1 = arith.constant 1 : index
    %c0_5 = arith.constant 0 : index
    %c0_6 = arith.constant 0 : index
    %15 = vector.load %arg2[%c1, %c0_5, %c0_6] : memref<4x256x256xf32, #tpu.memory_space<vmem>>, vector<1x256x256xf32>
    %16 = vector.shape_cast %15 : vector<1x256x256xf32> to vector<256x256xf32>
    %17 = math.absf %16 : vector<256x256xf32>
    %cst_7 = arith.constant dense<0.000000e+00> : vector<256xf32>
    %18 = vector.multi_reduction <add>, %17, %cst_7 [0] : vector<256x256xf32> to vector<256xf32>
    %19 = vector.shape_cast %18 : vector<256xf32> to vector<1x256xf32>
    %cst_8 = arith.constant 9.99999996E-13 : f32
    %20 = vector.broadcast %cst_8 : f32 to vector<1x256xf32>
    %21 = arith.maximumf %19, %20 : vector<1x256xf32>
    %22 = tpu.reciprocal %21 : vector<1x256xf32> -> vector<1x256xf32>
    %c1_9 = arith.constant 1 : index
    %23 = memref.load %arg1[%c1_9] : memref<4xf32, #tpu.memory_space<smem>>
    %24 = vector.broadcast %23 : f32 to vector<1x256xf32>
    %25 = arith.mulf %22, %24 : vector<1x256xf32>
    %26 = vector.broadcast %25 : vector<1x256xf32> to vector<256x256xf32>
    %27 = arith.mulf %16, %26 : vector<256x256xf32>
    %28 = arith.addf %14, %27 : vector<256x256xf32>
    %c2 = arith.constant 2 : index
    %c0_10 = arith.constant 0 : index
    %c0_11 = arith.constant 0 : index
    %29 = vector.load %arg2[%c2, %c0_10, %c0_11] : memref<4x256x256xf32, #tpu.memory_space<vmem>>, vector<1x256x256xf32>
    %30 = vector.shape_cast %29 : vector<1x256x256xf32> to vector<256x256xf32>
    %31 = math.absf %30 : vector<256x256xf32>
    %cst_12 = arith.constant dense<0.000000e+00> : vector<256xf32>
    %32 = vector.multi_reduction <add>, %31, %cst_12 [0] : vector<256x256xf32> to vector<256xf32>
    %33 = vector.shape_cast %32 : vector<256xf32> to vector<1x256xf32>
    %cst_13 = arith.constant 9.99999996E-13 : f32
    %34 = vector.broadcast %cst_13 : f32 to vector<1x256xf32>
    %35 = arith.maximumf %33, %34 : vector<1x256xf32>
    %36 = tpu.reciprocal %35 : vector<1x256xf32> -> vector<1x256xf32>
    %c2_14 = arith.constant 2 : index
    %37 = memref.load %arg1[%c2_14] : memref<4xf32, #tpu.memory_space<smem>>
    %38 = vector.broadcast %37 : f32 to vector<1x256xf32>
    %39 = arith.mulf %36, %38 : vector<1x256xf32>
    %40 = vector.broadcast %39 : vector<1x256xf32> to vector<256x256xf32>
    %41 = arith.mulf %30, %40 : vector<256x256xf32>
    %42 = arith.addf %28, %41 : vector<256x256xf32>
    %c3 = arith.constant 3 : index
    %c0_15 = arith.constant 0 : index
    %c0_16 = arith.constant 0 : index
    %43 = vector.load %arg2[%c3, %c0_15, %c0_16] : memref<4x256x256xf32, #tpu.memory_space<vmem>>, vector<1x256x256xf32>
    %44 = vector.shape_cast %43 : vector<1x256x256xf32> to vector<256x256xf32>
    %45 = math.absf %44 : vector<256x256xf32>
    %cst_17 = arith.constant dense<0.000000e+00> : vector<256xf32>
    %46 = vector.multi_reduction <add>, %45, %cst_17 [0] : vector<256x256xf32> to vector<256xf32>
    %47 = vector.shape_cast %46 : vector<256xf32> to vector<1x256xf32>
    %cst_18 = arith.constant 9.99999996E-13 : f32
    %48 = vector.broadcast %cst_18 : f32 to vector<1x256xf32>
    %49 = arith.maximumf %47, %48 : vector<1x256xf32>
    %50 = tpu.reciprocal %49 : vector<1x256xf32> -> vector<1x256xf32>
    %c3_19 = arith.constant 3 : index
    %51 = memref.load %arg1[%c3_19] : memref<4xf32, #tpu.memory_space<smem>>
    %52 = vector.broadcast %51 : f32 to vector<1x256xf32>
    %53 = arith.mulf %50, %52 : vector<1x256xf32>
    %54 = vector.broadcast %53 : vector<1x256xf32> to vector<256x256xf32>
    %55 = arith.mulf %44, %54 : vector<256x256xf32>
    %56 = arith.addf %42, %55 : vector<256x256xf32>
    %c0_20 = arith.constant 0 : index
    %c0_21 = arith.constant 0 : index
    %57 = vector.load %arg3[%c0_20, %c0_21] : memref<256x256xf32, #tpu.memory_space<vmem>>, vector<256x256xf32>
    tpu.vector_store %arg3[%c0_20, %c0_21], %56 {strides = array<i32>} : memref<256x256xf32, #tpu.memory_space<vmem>>, vector<256x256xf32>,
    return
  }
  func.func @transform_0(%arg0: i32) -> i32 {
    %c0_i32 = arith.constant 0 : i32
    %c0_i32_0 = arith.constant 0 : i32
    return %c0_i32 : i32
  }
  func.func @transform_1(%arg0: i32) -> (i32, i32, i32) {
    %c0_i32 = arith.constant 0 : i32
    %c0_i32_0 = arith.constant 0 : i32
    %c0_i32_1 = arith.constant 0 : i32
    %c0_i32_2 = arith.constant 0 : i32
    return %c0_i32, %c0_i32_0, %c0_i32_1 : i32, i32, i32
  }
  func.func @transform_2(%arg0: i32) -> (i32, i32) {
    %c0_i32 = arith.constant 0 : i32
    %c0_i32_0 = arith.constant 0 : i32
    %c0_i32_1 = arith.constant 0 : i32
    return %c0_i32, %c0_i32_0 : i32, i32
  }
}

</mosaic_0001>

<bundles_post_ra>
// kernel: tpu_custom_call.1
= control target key start
LH: loop header
LB: loop body
LE: loop exit
PB: predicated region body
PF: predicated region fallthrough
CT: control target
= control target key end

     0   :  { %7 = vsyncpa [#allocation5], 0  ;;  %s3378_s0 = inlined_call_operand.hbm [shape: f32[4], index: 0, kind: input, shape index: {}]   ;;  %s3379_s1 = inlined_call_operand.hbm [shape: f32[4,256,256], index: 1, kind: input, shape index: {}]   ;;  %s3380_s2 = inlined_call_operand.hbm [shape: f32[256,256], index: 2, kind: output, shape index: {}]  }
   0x1   :  { %8 = vsyncpa [#allocation3], 0 }
   0x2   :  { %9 = vsyncpa [#allocation4], 0  ;;  %s1766_s9 = smov [#allocation2]   ;;  %s1767_s12 = smov [#allocation6]  }
   0x3   :  { %17 = dma.hbm_to_smem %s3378_s0, 16, %s1766_s9, [#allocation5]  }
   0x4   :  { %s23_s13 = sshll.u32 %s1767_s12, 4  ;;  %s24_s13 = int_to_ptr.vmem [resolvable:$true] %s23_s13 }
   0x5   :  { %s1728_s14 = scalar_lea.vmem %s24_s13, 32768  ;;  %p1733_p1 = scmp.lt.s32.totalorder %s24_s13, %s24_s13 }
   0x6   :  { %p1729_p0 = scmp.ne.s32.totalorder %s24_s13, %s1728_s14  ;;  %p1734_p2 = scmp.lt.s32.totalorder %s1728_s14, %s1728_s14 }
   0x8   :  { %p1735_p3 = por %p1734_p2, %p1733_p1 }
   0xa   :  { %p1736_p4 = pnand %p1735_p3, %p1729_p0 }
   0xc   :  { %1739 = shalt.err (!%p1736_p4)
}
   0xd   :  { %s1768_s15 = smov 256   ;;  %s1769_s16 = smov 16  }
   0xe   :  { %29 = dma.hbm_to_vmem [thread:$0]  %s3379_s1, 32768, %s24_s13, [#allocation3], %s1768_s15, %s1768_s15, %s1769_s16  }
   0xf   :  { %1760 = dma.done.wait [#allocation5], 16  }
  0x10   :  { %1761 = vsyncadd [#allocation5], 4294967280 }
  0x11   :  { %1762 = dma.done.wait [#allocation3], 32768  }
  0x12   :  { %1763 = vsyncadd [#allocation3], 4294934528 }
  0x13   :  { %36 = sfence }
  0x14   :  { %v1795_v0 = vld [vmem:[#allocation6] sm:$0xff]  ;;  %v39_v1 = vld [vmem:[#allocation6 + $0x10] sm:$0xff]  ;;  %s1798_s0 = sld [smem:[#allocation2]]  ;;  %s1770_s21 = smov [#allocation7]  }
  0x15   :  { %v41_v2 = vld [vmem:[#allocation6 + $0x20] sm:$0xff]  ;;  %v43_v3 = vld [vmem:[#allocation6 + $0x30] sm:$0xff]  ;;  %v101_v4 = vand.u32 2147483647, %v1795_v0  ;;  %v103_v5 = vand.u32 2147483647, %v39_v1 }
  0x16   :  { %v45_v6 = vld [vmem:[#allocation6 + $0x40] sm:$0xff]  ;;  %v105_v7 = vand.u32 2147483647, %v41_v2  ;;  %v107_v8 = vand.u32 2147483647, %v43_v3  ;;  %v47_v10 = vld [vmem:[#allocation6 + $0x50] sm:$0xff] }
  0x17   :  { %v165_v9 = vadd.f32 %v103_v5, %v101_v4  ;;  %v109_v11 = vand.u32 2147483647, %v45_v6  ;;  %v49_v13 = vld [vmem:[#allocation6 + $0x60] sm:$0xff]  ;;  %v111_v14 = vand.u32 2147483647, %v47_v10  ;;  %v51_v16 = vld [vmem:[#allocation6 + $0x70] sm:$0xff] }
  0x18   :  { %v113_v17 = vand.u32 2147483647, %v49_v13  ;;  %v53_v19 = vld [vmem:[#allocation6 + $0x80] sm:$0xff]  ;;  %v115_v20 = vand.u32 2147483647, %v51_v16  ;;  %v55_v22 = vld [vmem:[#allocation6 + $0x90] sm:$0xff] }
  0x19   :  { %v166_v12 = vadd.f32 %v165_v9, %v105_v7  ;;  %v117_v23 = vand.u32 2147483647, %v53_v19  ;;  %v57_v25 = vld [vmem:[#allocation6 + $0xa0] sm:$0xff]  ;;  %v119_v26 = vand.u32 2147483647, %v55_v22  ;;  %v59_v28 = vld [vmem:[#allocation6 + $0xb0] sm:$0xff] }
  0x1a   :  { %v61_v29 = vld [vmem:[#allocation6 + $0xc0] sm:$0xff]  ;;  %v121_v30 = vand.u32 2147483647, %v57_v25  ;;  %v378_v33 = vld [vmem:[#allocation6 + $0x210] sm:$0xff]  ;;  %v123_v41 = vand.u32 2147483647, %v59_v28 }
  0x1b   :  { %v167_v15 = vadd.f32 %v166_v12, %v107_v8  ;;  %v376_v32 = vld [vmem:[#allocation6 + $0x200] sm:$0xff]  ;;  %v63_v35 = vld [vmem:[#allocation6 + $0xd0] sm:$0xff]  ;;  %v442_v43 = vand.u32 2147483647, %v378_v33  ;;  %v125_v50 = vand.u32 2147483647, %v61_v29 }
  0x1c   :  { %v380_v34 = vld [vmem:[#allocation6 + $0x220] sm:$0xff]  ;;  %v382_v37 = vld [vmem:[#allocation6 + $0x230] sm:$0xff]  ;;  %v440_v38 = vand.u32 2147483647, %v376_v32  ;;  %v127_v57 = vand.u32 2147483647, %v63_v35 }
  0x1d   :  { %v168_v18 = vadd.f32 %v167_v15, %v109_v11  ;;  %v65_v36 = vld [vmem:[#allocation6 + $0xe0] sm:$0xff]  ;;  %v67_v39 = vld [vmem:[#allocation6 + $0xf0] sm:$0xff]  ;;  %v444_v47 = vand.u32 2147483647, %v380_v34  ;;  %v446_v52 = vand.u32 2147483647, %v382_v37 }
  0x1e   :  { %v1800_v40 = vld [vmem:[#allocation6 + $0x100] sm:$0xff]  ;;  %v1802_v44 = vld [vmem:[#allocation6 + $0x110] sm:$0xff]  ;;  %v504_v53 = vadd.f32 %v442_v43, %v440_v38  ;;  %v129_v60 = vand.u32 2147483647, %v65_v36  ;;  %v131_v4 = vand.u32 2147483647, %v67_v39 }
  0x1f   :  { %v169_v21 = vadd.f32 %v168_v18, %v111_v14  ;;  %v1804_v45 = vld [vmem:[#allocation6 + $0x120] sm:$0xff]  ;;  %v1806_v48 = vld [vmem:[#allocation6 + $0x130] sm:$0xff]  ;;  %v133_v5 = vand.u32 2147483647, %v1800_v40  ;;  %v135_v6 = vand.u32 2147483647, %v1802_v44 }
  0x20   :  { %v384_v46 = vld [vmem:[#allocation6 + $0x240] sm:$0xff]  ;;  %v1810_v54 = vld [vmem:[#allocation6 + $0x150] sm:$0xff]  ;;  %v505_v1 = vadd.f32 %v504_v53, %v444_v47  ;;  %v137_v9 = vand.u32 2147483647, %v1804_v45  ;;  %v139_v10 = vand.u32 2147483647, %v1806_v48 }
  0x21   :  { %v170_v24 = vadd.f32 %v169_v21, %v113_v17  ;;  %v1808_v49 = vld [vmem:[#allocation6 + $0x140] sm:$0xff]  ;;  %v1814_v56 = vld [vmem:[#allocation6 + $0x170] sm:$0xff]  ;;  %v448_v63 = vand.u32 2147483647, %v384_v46  ;;  %v143_v16 = vand.u32 2147483647, %v1810_v54 }
  0x22   :  { %v1812_v55 = vld [vmem:[#allocation6 + $0x160] sm:$0xff]  ;;  %v1818_v59 = vld [vmem:[#allocation6 + $0x190] sm:$0xff]  ;;  %v506_v13 = vadd.f32 %v505_v1, %v446_v52  ;;  %v141_v15 = vand.u32 2147483647, %v1808_v49  ;;  %s1858_s1 = sld [smem:[#allocation2 + $0x1]]  ;;  %s1461_s22 = sshll.u32 %s1770_s21, 4  ;;  %s1462_s22 = int_to_ptr.vmem [resolvable:$true] %s1461_s22 }
  0x23   :  { %v171_v27 = vadd.f32 %v170_v24, %v115_v20  ;;  %v1816_v58 = vld [vmem:[#allocation6 + $0x180] sm:$0xff]  ;;  %v386_v62 = vld [vmem:[#allocation6 + $0x250] sm:$0xff]  ;;  %v145_v19 = vand.u32 2147483647, %v1812_v55  ;;  %v147_v20 = vand.u32 2147483647, %v1814_v56  ;;  %p1745_p6 = scmp.lt.s32.totalorder %s1462_s22, %s1462_s22 }
  0x24   :  { %v1820_v2 = vld [vmem:[#allocation6 + $0x1a0] sm:$0xff]  ;;  %v1822_v3 = vld [vmem:[#allocation6 + $0x1b0] sm:$0xff]  ;;  %v450_v17 = vand.u32 2147483647, %v386_v62  ;;  %v149_v24 = vand.u32 2147483647, %v1816_v58 }
  0x25   :  { %v172_v31 = vadd.f32 %v171_v27, %v117_v23  ;;  %v1826_v7 = vld [vmem:[#allocation6 + $0x1c0] sm:$0xff]  ;;  %v1828_v8 = vld [vmem:[#allocation6 + $0x1d0] sm:$0xff]  ;;  %v507_v23 = vadd.f32 %v506_v13, %v448_v63  ;;  %v151_v25 = vand.u32 2147483647, %v1818_v59  ;;  %v153_v27 = vand.u32 2147483647, %v1820_v2 }
  0x26   :  { %v388_v12 = vld [vmem:[#allocation6 + $0x260] sm:$0xff]  ;;  %v1836_v18 = vld [vmem:[#allocation6 + $0x1f0] sm:$0xff]  ;;  %v155_v28 = vand.u32 2147483647, %v1822_v3  ;;  %s1942_s19 = sld [smem:[#allocation2 + $0x2]]  ;;  %s1740_s23 = scalar_lea.vmem %s1462_s22, 8192 }
  0x27   :  { %v173_v42 = vadd.f32 %v172_v31, %v119_v26  ;;  %v1832_v14 = vld [vmem:[#allocation6 + $0x1e0] sm:$0xff]  ;;  %v390_v22 = vld [vmem:[#allocation6 + $0x270] sm:$0xff]  ;;  %v452_v26 = vand.u32 2147483647, %v388_v12  ;;  %v157_v31 = vand.u32 2147483647, %v1826_v7  ;;  %v508_v34 = vadd.f32 %v507_v23, %v450_v17  ;;  %p1741_p5 = scmp.ne.s32.totalorder %s1462_s22, %s1740_s23  ;;  %p1746_p7 = scmp.lt.s32.totalorder %s1740_s23, %s1740_s23 }
  0x28   :  { %v454_v33 = vand.u32 2147483647, %v390_v22  ;;  %v394_v38 = vld [vmem:[#allocation6 + $0x290] sm:$0xff]  ;;  %v396_v39 = vld [vmem:[#allocation6 + $0x2a0] sm:$0xff]  ;;  %v3457_v7 = vand.u32 2147483647, %v1828_v8 }
  0x29   :  { %v174_v51 = vadd.f32 %v173_v42, %v121_v30  ;;  %v392_v30 = vld [vmem:[#allocation6 + $0x280] sm:$0xff]  ;;  %v398_v40 = vld [vmem:[#allocation6 + $0x2b0] sm:$0xff]  ;;  %v509_v44 = vadd.f32 %v508_v34, %v452_v26  ;;  %v458_v53 = vand.u32 2147483647, %v394_v38  ;;  %v3459_v8 = vand.u32 2147483647, %v1832_v14  ;;  %p1747_p8 = por %p1746_p7, %p1745_p6 }
  0x2a   :  { %v1850_v42 = vld [vmem:[#allocation6 + $0x2d0] sm:$0xff]  ;;  %v456_v43 = vand.u32 2147483647, %v392_v30  ;;  %v1852_v46 = vld [vmem:[#allocation6 + $0x2e0] sm:$0xff]  ;;  %s2051_s20 = sld [smem:[#allocation2 + $0x3]] }
  0x2b   :  { %v175_v61 = vadd.f32 %v174_v51, %v123_v41  ;;  %v1848_v41 = vld [vmem:[#allocation6 + $0x2c0] sm:$0xff]  ;;  %v1854_v47 = vld [vmem:[#allocation6 + $0x2f0] sm:$0xff]  ;;  %v468_v30 = vand.u32 2147483647, %v1852_v46  ;;  %p1748_p9 = pnand %p1747_p8, %p1741_p5 }
  0x2c   :  { %v1860_v51 = vld [vmem:[#allocation6 + $0x310] sm:$0xff]  ;;  %v1862_v52 = vld [vmem:[#allocation6 + $0x320] sm:$0xff]  ;;  %v464_v17 = vand.u32 2147483647, %v1848_v41 }
  0x2d   :  { %v176_v11 = vadd.f32 %v175_v61, %v125_v50  ;;  %v1856_v50 = vld [vmem:[#allocation6 + $0x300] sm:$0xff]  ;;  %v1864_v62 = vld [vmem:[#allocation6 + $0x330] sm:$0xff] }
  0x2e   :  { %v1866_v63 = vld [vmem:[#allocation6 + $0x340] sm:$0xff]  ;;  %v1868_v1 = vld [vmem:[#allocation6 + $0x350] sm:$0xff]  ;;  %v472_v38 = vand.u32 2147483647, %v1856_v50 }
  0x2f   :  { %v177_v21 = vadd.f32 %v176_v11, %v127_v57  ;;  %v460_v57 = vand.u32 2147483647, %v396_v39  ;;  %v717_v11 = vld [vmem:[#allocation6 + $0x410] sm:$0xff]  ;;  %v719_v12 = vld [vmem:[#allocation6 + $0x420] sm:$0xff] }
  0x30   :  { %v1870_v13 = vld [vmem:[#allocation6 + $0x360] sm:$0xff]  ;;  %v781_v34 = vand.u32 2147483647, %v717_v11  ;;  %v783_v41 = vand.u32 2147483647, %v719_v12  ;;  %v1898_v11 = vld [vmem:[#allocation6 + $0x3d0] sm:$0xff] }
  0x31   :  { %v178_v29 = vadd.f32 %v177_v21, %v129_v60  ;;  %v510_v60 = vadd.f32 %v509_v44, %v454_v33  ;;  %v466_v21 = vand.u32 2147483647, %v1850_v42  ;;  %v470_v33 = vand.u32 2147483647, %v1854_v47  ;;  %v1901_v36 = vld [vmem:[#allocation6 + $0x3e0] sm:$0xff]  ;;  %v1916_v54 = vld [vmem:[#allocation6 + $0x470] sm:$0xff] }
  0x32   :  { %v474_v44 = vand.u32 2147483647, %v1860_v51  ;;  %v793_v12 = vand.u32 2147483647, %v1916_v54  ;;  %v1970_v54 = vld [vmem:[#allocation6 + $0x580] sm:$0xff]  ;;  %v1985_v59 = vld [vmem:[#allocation6 + $0x5b0] sm:$0xff] }
  0x33   :  { %v179_v37 = vadd.f32 %v178_v29, %v131_v4  ;;  %v462_v4 = vand.u32 2147483647, %v398_v40  ;;  %v511_v22 = vadd.f32 %v510_v60, %v456_v43  ;;  %v1876_v29 = vld [vmem:[#allocation6 + $0x380] sm:$0xff]  ;;  %v721_v40 = vld [vmem:[#allocation6 + $0x430] sm:$0xff]  ;;  %v478_v60 = vand.u32 2147483647, %v1864_v62 }
  0x34   :  { %v1887_v43 = vld [vmem:[#allocation6 + $0x3b0] sm:$0xff] }
  0x35   :  { %v180_v45 = vadd.f32 %v179_v37, %v133_v5  ;;  %v715_v5 = vld [vmem:[#allocation6 + $0x400] sm:$0xff]  ;;  %v1880_v37 = vld [vmem:[#allocation6 + $0x390] sm:$0xff]  ;;  %v512_v39 = vadd.f32 %v511_v22, %v458_v53  ;;  %v785_v22 = vand.u32 2147483647, %v721_v40 }
  0x36   :  { %v779_v23 = vand.u32 2147483647, %v715_v5  ;;  %v723_v53 = vld [vmem:[#allocation6 + $0x440] sm:$0xff]  ;;  %v2039_v62 = vld [vmem:[#allocation6 + $0x6b0] sm:$0xff] }
  0x37   :  { %v181_v61 = vadd.f32 %v180_v45, %v135_v6  ;;  %v1874_v6 = vld [vmem:[#allocation6 + $0x370] sm:$0xff]  ;;  %v476_v45 = vand.u32 2147483647, %v1862_v52  ;;  %v513_v5 = vadd.f32 %v512_v39, %v460_v57  ;;  %v1923_v40 = vld [vmem:[#allocation6 + $0x4a0] sm:$0xff] }
  0x38   :  { %v843_v46 = vadd.f32 %v781_v34, %v779_v23  ;;  %v725_v23 = vld [vmem:[#allocation6 + $0x450] sm:$0xff]  ;;  %v799_v47 = vand.u32 2147483647, %v1923_v40 }
  0x39   :  { %v182_v26 = vadd.f32 %v181_v61, %v137_v9  ;;  %v1885_v9 = vld [vmem:[#allocation6 + $0x3a0] sm:$0xff]  ;;  %v514_v35 = vadd.f32 %v513_v5, %v462_v4  ;;  %v1921_v34 = vld [vmem:[#allocation6 + $0x490] sm:$0xff] }
  0x3a   :  { %v727_v5 = vld [vmem:[#allocation6 + $0x460] sm:$0xff]  ;;  %v797_v32 = vand.u32 2147483647, %v1921_v34  ;;  %v1972_v34 = vld [vmem:[#allocation6 + $0x590] sm:$0xff] }
  0x3b   :  { %v183_v42 = vadd.f32 %v182_v26, %v139_v10  ;;  %v1896_v10 = vld [vmem:[#allocation6 + $0x3c0] sm:$0xff]  ;;  %v844_v26 = vadd.f32 %v843_v46, %v783_v41  ;;  %v515_v46 = vadd.f32 %v514_v35, %v464_v17  ;;  %v1925_v41 = vld [vmem:[#allocation6 + $0x4b0] sm:$0xff] }
  0x3c   :  { %v1930_v35 = vld [vmem:[#allocation6 + $0x4c0] sm:$0xff]  ;;  %v1932_v17 = vld [vmem:[#allocation6 + $0x4d0] sm:$0xff] }
  0x3d   :  { %v184_v48 = vadd.f32 %v183_v42, %v141_v15  ;;  %v1910_v42 = vld [vmem:[#allocation6 + $0x3f0] sm:$0xff]  ;;  %v845_v57 = vadd.f32 %v844_v26, %v785_v22  ;;  %v516_v15 = vadd.f32 %v515_v46, %v466_v21  ;;  %v1938_v21 = vld [vmem:[#allocation6 + $0x500] sm:$0xff]  ;;  %v3466_v50 = vand.u32 2147483647, %v1930_v35 }
  0x3e   :  { %v1936_v26 = vld [vmem:[#allocation6 + $0x4f0] sm:$0xff] }
  0x3f   :  { %v185_v49 = vadd.f32 %v184_v48, %v143_v16  ;;  %v1918_v16 = vld [vmem:[#allocation6 + $0x480] sm:$0xff]  ;;  %v787_v48 = vand.u32 2147483647, %v723_v53  ;;  %v517_v22 = vadd.f32 %v516_v15, %v468_v30  ;;  %v1948_v46 = vld [vmem:[#allocation6 + $0x530] sm:$0xff] }
  0x40   :  { %v1934_v53 = vld [vmem:[#allocation6 + $0x4e0] sm:$0xff]  ;;  %v795_v61 = vand.u32 2147483647, %v1918_v16 }
  0x41   :  { %v186_v4 = vadd.f32 %v185_v49, %v145_v19  ;;  %v1940_v49 = vld [vmem:[#allocation6 + $0x510] sm:$0xff]  ;;  %v791_v19 = vand.u32 2147483647, %v727_v5  ;;  %v846_v39 = vadd.f32 %v845_v57, %v787_v48  ;;  %v518_v30 = vadd.f32 %v517_v22, %v470_v33  ;;  %v1952_v15 = vld [vmem:[#allocation6 + $0x540] sm:$0xff] }
  0x42   :  { %v1979_v22 = vld [vmem:[#allocation6 + $0x5a0] sm:$0xff]  ;;  %v1056_v57 = vld [vmem:[#allocation6 + $0x610] sm:$0xff] }
  0x43   :  { %v187_v55 = vadd.f32 %v186_v4, %v147_v20  ;;  %v1946_v20 = vld [vmem:[#allocation6 + $0x520] sm:$0xff]  ;;  %v789_v4 = vand.u32 2147483647, %v725_v23  ;;  %v1963_v23 = vld [vmem:[#allocation6 + $0x570] sm:$0xff]  ;;  %v519_v5 = vadd.f32 %v518_v30, %v472_v38 }
  0x44   :  { %v1054_v30 = vld [vmem:[#allocation6 + $0x600] sm:$0xff] }
  0x45   :  { %v188_v56 = vadd.f32 %v187_v55, %v149_v24  ;;  %v1959_v24 = vld [vmem:[#allocation6 + $0x550] sm:$0xff]  ;;  %v1961_v55 = vld [vmem:[#allocation6 + $0x560] sm:$0xff]  ;;  %v847_v38 = vadd.f32 %v846_v39, %v789_v4  ;;  %v520_v33 = vadd.f32 %v519_v5, %v474_v44  ;;  %v1118_v2 = vand.u32 2147483647, %v1054_v30 }
  0x46   :  { %v1058_v4 = vld [vmem:[#allocation6 + $0x620] sm:$0xff]  ;;  %v1060_v44 = vld [vmem:[#allocation6 + $0x630] sm:$0xff] }
  0x47   :  { %v189_v58 = vadd.f32 %v188_v56, %v151_v25  ;;  %v848_v39 = vadd.f32 %v847_v38, %v791_v19  ;;  %v1120_v56 = vand.u32 2147483647, %v1056_v57  ;;  %v521_v51 = vadd.f32 %v520_v33, %v476_v45  ;;  %v2009_v45 = vld [vmem:[#allocation6 + $0x5f0] sm:$0xff] }
  0x48   :  { %3456 = vst [vmem:[#allocation12_spill] sm:$0xff] %v2009_v45  ;;  %v1122_v30 = vand.u32 2147483647, %v1058_v4  ;;  %v2022_v4 = vld [vmem:[#allocation6 + $0x650] sm:$0xff]  ;;  %v1124_v14 = vand.u32 2147483647, %v1060_v44 }
  0x49   :  { %v190_v48 = vadd.f32 %v189_v58, %v153_v27  ;;  %v1991_v58 = vld [vmem:[#allocation6 + $0x5c0] sm:$0xff]  ;;  %v849_v38 = vadd.f32 %v848_v39, %v793_v12  ;;  %v522_v52 = vadd.f32 %v521_v51, %v478_v60  ;;  %v1182_v16 = vadd.f32 %v1120_v56, %v1118_v2  ;;  %v2047_v5 = vld [vmem:[#allocation6 + $0x6d0] sm:$0xff] }
  0x4a   :  { %v3458_v12 = vand.u32 2147483647, %v1866_v63  ;;  %v2020_v51 = vld [vmem:[#allocation6 + $0x640] sm:$0xff]  ;;  %v2056_v44 = vld [vmem:[#allocation6 + $0x6f0] sm:$0xff]  ;;  %v1128_v40 = vand.u32 2147483647, %v2022_v4 }
  0x4b   :  { %v191_v27 = vadd.f32 %v190_v48, %v155_v28  ;;  %v2001_v28 = vld [vmem:[#allocation6 + $0x5d0] sm:$0xff]  ;;  %v2003_v48 = vld [vmem:[#allocation6 + $0x5e0] sm:$0xff]  ;;  %v850_v19 = vadd.f32 %v849_v38, %v795_v61 }
  0x4c   :  { %3455 = vst [vmem:[#allocation11_spill] sm:$0xff] %v2003_v48  ;;  %v523_v39 = vadd.f32 %v522_v52, %v3458_v12  ;;  %v2027_v61 = vld [vmem:[#allocation6 + $0x660] sm:$0xff]  ;;  %v2029_v38 = vld [vmem:[#allocation6 + $0x670] sm:$0xff]  ;;  %v3460_v52 = vand.u32 2147483647, %v1868_v1 }
  0x4d   :  { %v192_v3 = vadd.f32 %v191_v27, %v157_v31  ;;  %v2031_v63 = vld [vmem:[#allocation6 + $0x680] sm:$0xff]  ;;  %v2035_v12 = vld [vmem:[#allocation6 + $0x690] sm:$0xff] }
  0x4e   :  { %v2037_v60 = vld [vmem:[#allocation6 + $0x6a0] sm:$0xff]  ;;  %v2068_v33 = vld [vmem:[#allocation6 + $0x730] sm:$0xff] }
  0x4f   :  { %v193_v31 = vadd.f32 %v192_v3, %v3457_v7  ;;  %v851_v3 = vadd.f32 %v850_v19, %v797_v32  ;;  %v524_v7 = vadd.f32 %v523_v39, %v3460_v52  ;;  %v3461_v32 = vand.u32 2147483647, %v1836_v18  ;;  %v2045_v2 = vld [vmem:[#allocation6 + $0x6c0] sm:$0xff]  ;;  %v2076_v4 = vld [vmem:[#allocation6 + $0x750] sm:$0xff] }
  0x50   :  { %v2049_v1 = vld [vmem:[#allocation6 + $0x6e0] sm:$0xff]  ;;  %v3462_v52 = vand.u32 2147483647, %v1870_v13  ;;  %v1126_v18 = vand.u32 2147483647, %v2020_v51  ;;  %3465 = vst [vmem:[#allocation13_spill] sm:$0xff] %v2076_v4 }
  0x51   :  { %v194_v56 = vadd.f32 %v193_v31, %v3459_v8  ;;  %v1183_v31 = vadd.f32 %v1182_v16, %v1122_v30  ;;  %v852_v8 = vadd.f32 %v851_v3, %v799_v47  ;;  %v2058_v16 = vld [vmem:[#allocation6 + $0x700] sm:$0xff]  ;;  %v3463_v30 = vand.u32 2147483647, %v1925_v41  ;;  %v2064_v3 = vld [vmem:[#allocation6 + $0x710] sm:$0xff]  ;;  %v40_v41 = vld [vmem:[#allocation6 + $0x18] sm:$0xff] }
  0x52   :  { %v525_v27 = vadd.f32 %v524_v7, %v3462_v52  ;;  %v1130_v13 = vand.u32 2147483647, %v2027_v61  ;;  %v3464_v52 = vand.u32 2147483647, %v1874_v6  ;;  %v2074_v51 = vld [vmem:[#allocation6 + $0x740] sm:$0xff]  ;;  %v2084_v61 = vld [vmem:[#allocation6 + $0x770] sm:$0xff] }
  0x53   :  { %v195_v19 = vadd.f32 %v194_v56, %v3461_v32  ;;  %v853_v56 = vadd.f32 %v852_v8, %v3463_v30  ;;  %v2066_v32 = vld [vmem:[#allocation6 + $0x720] sm:$0xff]  ;;  %v1184_v30 = vadd.f32 %v1183_v31, %v1124_v14  ;;  %v3469_v31 = vand.u32 2147483647, %v1932_v17 }
  0x54   :  { %v526_v57 = vadd.f32 %v525_v27, %v3464_v52  ;;  %v2082_v45 = vld [vmem:[#allocation6 + $0x760] sm:$0xff]  ;;  %v3468_v52 = vand.u32 2147483647, %v1876_v29  ;;  %v38_v29 = vld [vmem:[#allocation6 + $0x8] sm:$0xff]  ;;  %v3471_v17 = vand.u32 2147483647, %v1934_v53 }
  0x55   :  { %v196_v47 = vrot.slane %v195_v19, 4  ;;  %v854_v25 = vadd.f32 %v853_v56, %v3466_v50  ;;  %3467 = vst [vmem:[#allocation14_spill] sm:$0xff] %v2082_v45  ;;  %v2090_v48 = vld [vmem:[#allocation6 + $0x780] sm:$0xff]  ;;  %v1185_v53 = vadd.f32 %v1184_v30, %v1126_v18  ;;  %v2122_v56 = vld [vmem:[#allocation6 + $0x7d0] sm:$0xff]  ;;  %v102_v14 = vand.u32 2147483647, %v38_v29 }
  0x56   :  { %v527_v7 = vadd.f32 %v526_v57, %v3468_v52  ;;  %v3470_v57 = vand.u32 2147483647, %v1880_v37  ;;  %v3473_v37 = vand.u32 2147483647, %v1885_v9  ;;  %v2116_v8 = vld [vmem:[#allocation6 + $0x7c0] sm:$0xff]  ;;  %3477 = vst [vmem:[#allocation18_spill] sm:$0xff] %v2122_v56 }
  0x57   :  { %v197_v39 = vadd.f32 %v196_v47, %v195_v19  ;;  %v855_v19 = vadd.f32 %v854_v25, %v3469_v31  ;;  %v2097_v47 = vld [vmem:[#allocation6 + $0x790] sm:$0xff]  ;;  %v2108_v31 = vld [vmem:[#allocation6 + $0x7a0] sm:$0xff]  ;;  %3475 = vst [vmem:[#allocation17_spill] sm:$0xff] %v2116_v8  ;;  %v3478_v9 = vand.u32 2147483647, %v1887_v43  ;;  %v1186_v35 = vadd.f32 %v1185_v53, %v1128_v40  ;;  %v42_v45 = vld [vmem:[#allocation6 + $0x28] sm:$0xff] }
  0x58   :  { %v528_v52 = vadd.f32 %v527_v7, %v3470_v57  ;;  %3472 = vst [vmem:[#allocation15_spill] sm:$0xff] %v2108_v31  ;;  %v2114_v57 = vld [vmem:[#allocation6 + $0x7b0] sm:$0xff]  ;;  %v3480_v30 = vand.u32 2147483647, %v1938_v21  ;;  %v2136_v43 = vld [vmem:[#allocation6 + $0x38] sm:$0xff]  ;;  %v2142_v53 = vld [vmem:[#allocation6 + $0x48] sm:$0xff] }
  0x59   :  { %v198_v50 = vrot.slane %v197_v39, 2  ;;  %v856_v25 = vadd.f32 %v855_v19, %v3471_v17  ;;  %3474 = vst [vmem:[#allocation16_spill] sm:$0xff] %v2114_v57  ;;  %v3476_v19 = vand.u32 2147483647, %v1936_v26  ;;  %v2144_v21 = vld [vmem:[#allocation6 + $0x58] sm:$0xff]  ;;  %v2148_v29 = vld [vmem:[#allocation6 + $0x68] sm:$0xff] }
  0x5a   :  { %v529_v7 = vadd.f32 %v528_v52, %v3473_v37  ;;  %v2127_v37 = vld [vmem:[#allocation6 + $0x7e0] sm:$0xff]  ;;  %v2158_v27 = vld [vmem:[#allocation6 + $0x88] sm:$0xff]  ;;  %v3498_v8 = vand.u32 2147483647, %v2039_v62 }
  0x5b   :  { %v199_v6 = vadd.f32 %v198_v50, %v197_v39  ;;  %v857_v17 = vadd.f32 %v856_v25, %v3476_v19  ;;  %3479 = vst [vmem:[#allocation19_spill] sm:$0xff] %v2127_v37  ;;  %v104_v39 = vand.u32 2147483647, %v40_v41  ;;  %v2132_v25 = vld [vmem:[#allocation6 + $0x7f0] sm:$0xff]  ;;  %v2150_v19 = vld [vmem:[#allocation6 + $0x78] sm:$0xff]  ;;  %v2234_v31 = vld [vmem:[#allocation6 + $0x1c8] sm:$0xff] }
  0x5c   :  { %v530_v52 = vadd.f32 %v529_v7, %v3478_v9  ;;  %3481 = vst [vmem:[#allocation20_spill] sm:$0xff] %v2132_v25  ;;  %v3482_v7 = vand.u32 2147483647, %v1896_v10  ;;  %v106_v10 = vand.u32 2147483647, %v42_v45  ;;  %v2188_v41 = vld [vmem:[#allocation6 + $0x118] sm:$0xff] }
  0x5d   :  { %v200_v50 = vrot.slane %v199_v6, 1  ;;  %v858_v26 = vadd.f32 %v857_v17, %v3480_v30  ;;  %v3483_v17 = vand.u32 2147483647, %v1940_v49  ;;  %v2162_v49 = vld [vmem:[#allocation6 + $0xa8] sm:$0xff]  ;;  %3490 = vst [vmem:[#allocation21_spill] sm:$0xff] %v2188_v41  ;;  %v2198_v37 = vld [vmem:[#allocation6 + $0x138] sm:$0xff] }
  0x5e   :  { %v531_v9 = vadd.f32 %v530_v52, %v3482_v7  ;;  %v202_v52 = vadd.f32 %v104_v39, %v102_v14  ;;  %v3484_v7 = vand.u32 2147483647, %v1898_v11  ;;  %v2168_v39 = vld [vmem:[#allocation6 + $0xb8] sm:$0xff]  ;;  %v3489_v14 = vand.u32 2147483647, %v1948_v46  ;;  %3499 = vst [vmem:[#allocation24_spill] sm:$0xff] %v2234_v31 }
  0x5f   :  { %v201_v18 = vadd.f32 %v200_v50, %v199_v6  ;;  %v1187_v6 = vadd.f32 %v1186_v35, %v1130_v13  ;;  %v859_v30 = vadd.f32 %v858_v26, %v3483_v17  ;;  %v3485_v35 = vand.u32 2147483647, %v2029_v38  ;;  %v2172_v17 = vld [vmem:[#allocation6 + $0xd8] sm:$0xff]  ;;  %v2178_v13 = vld [vmem:[#allocation6 + $0xe8] sm:$0xff] }
  0x60   :  { %v532_v40 = vadd.f32 %v531_v9, %v3484_v7  ;;  %v3486_v26 = vand.u32 2147483647, %v1946_v20  ;;  %v2170_v9 = vld [vmem:[#allocation6 + $0xc8] sm:$0xff]  ;;  %v3487_v38 = vand.u32 2147483647, %v1901_v36  ;;  %v2202_v46 = vld [vmem:[#allocation6 + $0x158] sm:$0xff] }
  0x61   :  { %v239_v50 = vmax.f32 %v201_v18, 1e-12  ;;  %v1188_v4 = vadd.f32 %v1187_v6, %v3485_v35  ;;  %v2160_v18 = vld [vmem:[#allocation6 + $0x98] sm:$0xff]  ;;  %v3488_v7 = vand.u32 2147483647, %v2031_v63  ;;  %v2182_v20 = vld [vmem:[#allocation6 + $0x108] sm:$0xff] }
  0x62   :  { %v860_v45 = vadd.f32 %v859_v30, %v3486_v26  ;;  %v533_v6 = vadd.f32 %v532_v40, %v3487_v38  ;;  %v108_v30 = vand.u32 2147483647, %v2136_v43  ;;  %v2190_v36 = vld [vmem:[#allocation6 + $0x128] sm:$0xff]  ;;  %v203_v40 = vadd.f32 %v202_v52, %v106_v10  ;;  %v379_v41 = vld [vmem:[#allocation6 + $0x218] sm:$0xff] }
  0x63   :  { %1482 = vrcp.f32 %v239_v50  ;;  %v1189_v35 = vadd.f32 %v1188_v4, %v3488_v7  ;;  %v2180_v50 = vld [vmem:[#allocation6 + $0xf8] sm:$0xff]  ;;  %3491 = vst [vmem:[#allocation22_spill] sm:$0xff] %v2190_v36  ;;  %v3492_v38 = vand.u32 2147483647, %v1910_v42  ;;  %v3493_v25 = vand.u32 2147483647, %v2035_v12 }
  0x64   :  { %v861_v11 = vadd.f32 %v860_v45, %v3489_v14  ;;  %v2200_v26 = vld [vmem:[#allocation6 + $0x148] sm:$0xff]  ;;  %v3494_v63 = vand.u32 2147483647, %v1952_v15  ;;  %v2210_v42 = vld [vmem:[#allocation6 + $0x178] sm:$0xff]  ;;  %v3497_v12 = vand.u32 2147483647, %v1959_v24 }
  0x65   :  { %v534_v7 = vadd.f32 %v533_v6, %v3492_v38  ;;  %v1190_v43 = vadd.f32 %v1189_v35, %v3493_v25  ;;  %v2208_v10 = vld [vmem:[#allocation6 + $0x168] sm:$0xff]  ;;  %v3495_v35 = vand.u32 2147483647, %v2037_v60  ;;  %v2219_v14 = vld [vmem:[#allocation6 + $0x198] sm:$0xff]  ;;  %v3503_v24 = vand.u32 2147483647, %v1963_v23 }
  0x66   :  { %v862_v4 = vadd.f32 %v861_v11, %v3494_v63  ;;  %v2217_v45 = vld [vmem:[#allocation6 + $0x188] sm:$0xff]  ;;  %v2227_v25 = vld [vmem:[#allocation6 + $0x1b8] sm:$0xff]  ;;  %v204_v63 = vadd.f32 %v203_v40, %v108_v30  ;;  %v443_v30 = vand.u32 2147483647, %v379_v41  ;;  %v3510_v40 = vstv %s1798_s0 }
  0x67   :  { %v535_v6 = vrot.slane %v534_v7, 4  ;;  %v1191_v38 = vadd.f32 %v1190_v43, %v3495_v35  ;;  %v2221_v15 = vld [vmem:[#allocation6 + $0x1a8] sm:$0xff]  ;;  %v2236_v11 = vld [vmem:[#allocation6 + $0x1d8] sm:$0xff]  ;;  %v3514_v41 = vand.u32 2147483647, %v2144_v21 }
  0x68   :  { %3496 = vst [vmem:[#allocation23_spill] sm:$0xff] %v2221_v15  ;;  %v863_v56 = vadd.f32 %v862_v4, %v3497_v12  ;;  %3500 = vst [vmem:[#allocation25_spill] sm:$0xff] %v2236_v11  ;;  %v377_v4 = vld [vmem:[#allocation6 + $0x208] sm:$0xff]  ;;  %v3501_v12 = vand.u32 2147483647, %v1961_v55  ;;  %v2269_v15 = vld [vmem:[#allocation6 + $0x238] sm:$0xff] }
  0x69   :  { %v536_v35 = vadd.f32 %v535_v6, %v534_v7  ;;  %v1192_v57 = vadd.f32 %v1191_v38, %v3498_v8  ;;  %v3502_v8 = vand.u32 2147483647, %v2045_v2  ;;  %v3504_v7 = vand.u32 2147483647, %v2047_v5  ;;  %v2256_v2 = vld [vmem:[#allocation6 + $0x1e8] sm:$0xff]  ;;  %v3534_v11 = vld [vmem:[#allocation11_spill] sm:$0xff] }
  0x6a   :  { %v864_v52 = vadd.f32 %v863_v56, %v3501_v12  ;;  %3505 = vst [vmem:[#allocation26_spill] sm:$0xff] %v2256_v2  ;;  %v381_v23 = vld [vmem:[#allocation6 + $0x228] sm:$0xff]  ;;  %v3509_v55 = vand.u32 2147483647, %v2142_v53  ;;  %v2280_v56 = vld [vmem:[#allocation6 + $0x258] sm:$0xff] }
  0x6b   :  { %v537_v62 = vrot.slane %v536_v35, 2  ;;  %v1193_v6 = vadd.f32 %v1192_v57, %v3502_v8  ;;  %v2258_v57 = vld [vmem:[#allocation6 + $0x1f8] sm:$0xff]  ;;  %v2278_v12 = vld [vmem:[#allocation6 + $0x248] sm:$0xff]  ;;  %v3513_v53 = vand.u32 2147483647, %v2056_v44 }
  0x6c   :  { %v865_v36 = vadd.f32 %v864_v52, %v3503_v24  ;;  %3506 = vst [vmem:[#allocation27_spill] sm:$0xff] %v2258_v57  ;;  %v3507_v52 = vand.u32 2147483647, %v1970_v54  ;;  %v205_v38 = vadd.f32 %v204_v63, %v3509_v55  ;;  %v2300_v44 = vld [vmem:[#allocation6 + $0x2b8] sm:$0xff]  ;;  %v2315_v55 = vld [vmem:[#allocation6 + $0x2e8] sm:$0xff] }
  0x6d   :  { %v538_v43 = vadd.f32 %v537_v62, %v536_v35  ;;  %v1194_v60 = vadd.f32 %v1193_v6, %v3504_v7  ;;  %v441_v35 = vand.u32 2147483647, %v377_v4  ;;  %v3508_v7 = vand.u32 2147483647, %v2049_v1  ;;  %v2313_v4 = vld [vmem:[#allocation6 + $0x2d8] sm:$0xff] }
  0x6e   :  { %v866_v24 = vadd.f32 %v865_v36, %v3507_v52  ;;  %v3512_v36 = vand.u32 2147483647, %v1972_v34  ;;  %v445_v1 = vand.u32 2147483647, %v381_v23  ;;  %v2289_v34 = vld [vmem:[#allocation6 + $0x278] sm:$0xff] }
  0x6f   :  { %v539_v5 = vrot.slane %v538_v43, 1  ;;  %v1195_v6 = vadd.f32 %v1194_v60, %v3508_v7  ;;  %v2287_v7 = vld [vmem:[#allocation6 + $0x268] sm:$0xff]  ;;  %v2296_v23 = vld [vmem:[#allocation6 + $0x298] sm:$0xff]  ;;  %v541_v21 = vadd.f32 %v443_v30, %v441_v35  ;;  %v3518_v8 = vand.u32 2147483647, %v1985_v59 }
  0x70   :  { %v1483_v62 = vpop.eup %1482  ;;  %v867_v52 = vadd.f32 %v866_v24, %v3512_v36  ;;  %v2291_v24 = vld [vmem:[#allocation6 + $0x288] sm:$0xff]  ;;  %v2319_v30 = vld [vmem:[#allocation6 + $0x2f8] sm:$0xff] }
  0x71   :  { %v2273_v54 = vmul.f32 %v1483_v62, %v3510_v40  ;;  %v540_v60 = vadd.f32 %v539_v5, %v538_v43  ;;  %v1196_v63 = vadd.f32 %v1195_v6, %v3513_v53  ;;  %v206_v62 = vadd.f32 %v205_v38, %v3514_v41  ;;  %v2298_v43 = vld [vmem:[#allocation6 + $0x2a8] sm:$0xff]  ;;  %v2329_v5 = vld [vmem:[#allocation6 + $0x318] sm:$0xff] }
  0x72   :  { %v3515_v40 = vand.u32 2147483647, %v1979_v22  ;;  %v3516_v53 = vand.u32 2147483647, %v2058_v16  ;;  %v3517_v22 = vand.u32 2147483647, %v2148_v29 }
  0x73   :  { %3511 = vst [vmem:[#allocation28_spill] sm:$0xff] %v2273_v54  ;;  %v2305_v38 = vmul.f32 %v2273_v54, %v1795_v0  ;;  %v578_v6 = vmax.f32 %v540_v60, 1e-12  ;;  %v2321_v0 = vld [vmem:[#allocation6 + $0x308] sm:$0xff]  ;;  %v3519_v29 = vand.u32 2147483647, %v2064_v3 }
  0x74   :  { %v868_v36 = vadd.f32 %v867_v52, %v3515_v40  ;;  %v1197_v41 = vadd.f32 %v1196_v63, %v3516_v53  ;;  %v207_v52 = vadd.f32 %v206_v62, %v3517_v22  ;;  %v2311_v40 = vld [vmem:[#allocation6 + $0x2c8] sm:$0xff]  ;;  %v542_v63 = vadd.f32 %v541_v21, %v445_v1  ;;  %v2340_v1 = vld [vmem:[#allocation6 + $0x358] sm:$0xff] }
  0x75   :  { %1484 = vrcp.f32 %v578_v6  ;;  %v3520_v53 = vand.u32 2147483647, %v2150_v19  ;;  %v2331_v59 = vld [vmem:[#allocation6 + $0x328] sm:$0xff]  ;;  %v3522_v60 = vand.u32 2147483647, %v1991_v58  ;;  %v2351_v58 = vld [vmem:[#allocation6 + $0x378] sm:$0xff] }
  0x76   :  { %v869_v35 = vadd.f32 %v868_v36, %v3518_v8  ;;  %v1198_v62 = vadd.f32 %v1197_v41, %v3519_v29  ;;  %v2333_v8 = vld [vmem:[#allocation6 + $0x338] sm:$0xff]  ;;  %v2338_v16 = vld [vmem:[#allocation6 + $0x348] sm:$0xff]  ;;  %v3523_v6 = vand.u32 2147483647, %v2066_v32  ;;  %3525 = vst [vmem:[#allocation30_spill] sm:$0xff] %v2351_v58 }
  0x77   :  { %v208_v22 = vadd.f32 %v207_v52, %v3520_v53  ;;  %3521 = vst [vmem:[#allocation29_spill] sm:$0xff] %v2333_v8  ;;  %v3524_v52 = vand.u32 2147483647, %v2158_v27  ;;  %v2349_v53 = vld [vmem:[#allocation6 + $0x368] sm:$0xff]  ;;  %v3527_v19 = vand.u32 2147483647, %v2001_v28 }
  0x78   :  { %v870_v57 = vadd.f32 %v869_v35, %v3522_v60  ;;  %v1199_v41 = vadd.f32 %v1198_v62, %v3523_v6  ;;  %v2353_v35 = vld [vmem:[#allocation6 + $0x388] sm:$0xff]  ;;  %v2359_v21 = vld [vmem:[#allocation6 + $0x398] sm:$0xff]  ;;  %v3530_v6 = vand.u32 2147483647, %v2068_v33  ;;  %v3531_v60 = vand.u32 2147483647, %v2160_v18 }
  0x79   :  { %v209_v29 = vadd.f32 %v208_v22, %v3524_v52  ;;  %3526 = vst [vmem:[#allocation31_spill] sm:$0xff] %v2353_v35  ;;  %3528 = vst [vmem:[#allocation32_spill] sm:$0xff] %v2359_v21  ;;  %v2361_v32 = vld [vmem:[#allocation6 + $0x3a8] sm:$0xff]  ;;  %v2370_v3 = vld [vmem:[#allocation6 + $0x3b8] sm:$0xff]  ;;  %v3535_v27 = vand.u32 2147483647, %v3534_v11 }
  0x7a   :  { %v871_v36 = vadd.f32 %v870_v57, %v3527_v19  ;;  %3529 = vst [vmem:[#allocation33_spill] sm:$0xff] %v2361_v32  ;;  %v1200_v52 = vadd.f32 %v1199_v41, %v3530_v6  ;;  %3532 = vst [vmem:[#allocation34_spill] sm:$0xff] %v2370_v3  ;;  %v2372_v28 = vld [vmem:[#allocation6 + $0x3c8] sm:$0xff]  ;;  %v3536_v18 = vand.u32 2147483647, %v2074_v51  ;;  %v2385_v6 = vld [vmem:[#allocation6 + $0x3d8] sm:$0xff] }
  0x7b   :  { %v210_v2 = vadd.f32 %v209_v29, %v3531_v60  ;;  %3533 = vst [vmem:[#allocation35_spill] sm:$0xff] %v2372_v28  ;;  %v3537_v29 = vand.u32 2147483647, %v2162_v49  ;;  %3538 = vst [vmem:[#allocation11_spill] sm:$0xff] %v2385_v6  ;;  %v2387_v57 = vld [vmem:[#allocation6 + $0x3e8] sm:$0xff]  ;;  %v2400_v8 = vld [vmem:[#allocation6 + $0x3f8] sm:$0xff] }
  0x7c   :  { %v872_v31 = vadd.f32 %v871_v36, %v3535_v27  ;;  %v1201_v41 = vadd.f32 %v1200_v52, %v3536_v18  ;;  %3539 = vst [vmem:[#allocation36_spill] sm:$0xff] %v2387_v57  ;;  %v3540_v36 = vld [vmem:[#allocation12_spill] sm:$0xff]  ;;  %v3542_v52 = vld [vmem:[#allocation13_spill] sm:$0xff]  ;;  %v3544_v18 = vand.u32 2147483647, %v2168_v39  ;;  %v718_v11 = vld [vmem:[#allocation6 + $0x418] sm:$0xff] }
  0x7d   :  { %v211_v60 = vadd.f32 %v210_v2, %v3537_v29  ;;  %v3541_v27 = vand.u32 2147483647, %v3540_v36  ;;  %v3543_v49 = vand.u32 2147483647, %v3542_v52  ;;  %3545 = vst [vmem:[#allocation12_spill] sm:$0xff] %v2400_v8  ;;  %v716_v22 = vld [vmem:[#allocation6 + $0x408] sm:$0xff] }
  0x7e   :  { %v3546_v33 = vand.u32 2147483647, %v2269_v15  ;;  %v3547_v52 = vld [vmem:[#allocation14_spill] sm:$0xff]  ;;  %v3549_v39 = vand.u32 2147483647, %v2170_v9  ;;  %v720_v15 = vld [vmem:[#allocation6 + $0x428] sm:$0xff] }
  0x7f   :  { %v873_v62 = vadd.f32 %v872_v31, %v3541_v27  ;;  %v1202_v2 = vadd.f32 %v1201_v41, %v3543_v49  ;;  %v212_v29 = vadd.f32 %v211_v60, %v3544_v18  ;;  %v3548_v41 = vand.u32 2147483647, %v3547_v52  ;;  %v2444_v18 = vld [vmem:[#allocation6 + $0x458] sm:$0xff]  ;;  %v2448_v8 = vld [vmem:[#allocation6 + $0x468] sm:$0xff]  ;;  %v1501_v57 = vld [vmem:[#allocation6 + $0x200] sm:$0xff] }
  0x80   :  { %v543_v51 = vadd.f32 %v542_v63, %v3546_v33  ;;  %v3550_v27 = vand.u32 2147483647, %v2278_v12  ;;  %v1498_v63 = vld [vmem:[#allocation6 + $0x10] sm:$0xff]  ;;  %v3551_v9 = vand.u32 2147483647, %v2084_v61  ;;  %3561 = vst [vmem:[#allocation39_spill] sm:$0xff] %v2444_v18 }
  0x81   :  { %v874_v36 = vrot.slane %v873_v62, 4  ;;  %v1203_v49 = vadd.f32 %v1202_v2, %v3548_v41  ;;  %v213_v60 = vadd.f32 %v212_v29, %v3549_v39  ;;  %v2418_v33 = vmul.f32 %v1498_v63, %v2273_v54  ;;  %v2424_v41 = vld [vmem:[#allocation6 + $0x438] sm:$0xff]  ;;  %v2431_v63 = vld [vmem:[#allocation6 + $0x448] sm:$0xff]  ;;  %v1500_v61 = vld [vmem:[#allocation6 + $0x30] sm:$0xff]  ;;  %3563 = vst [vmem:[#allocation40_spill] sm:$0xff] %v2448_v8 }
  0x82   :  { %v544_v28 = vadd.f32 %v543_v51, %v3550_v27  ;;  %v3552_v29 = vand.u32 2147483647, %v2172_v17  ;;  %3553 = vst [vmem:[#allocation13_spill] sm:$0xff] %v2424_v41  ;;  %v1485_v12 = vpop.eup %1484  ;;  %v3555_v27 = vand.u32 2147483647, %v2280_v56  ;;  %3556 = vst [vmem:[#allocation37_spill] sm:$0xff] %v2431_v63  ;;  %v3558_v17 = vstv %s1858_s1 }
  0x83   :  { %v875_v32 = vadd.f32 %v874_v36, %v873_v62  ;;  %v1204_v2 = vadd.f32 %v1203_v49, %v3551_v9  ;;  %v780_v62 = vand.u32 2147483647, %v716_v22  ;;  %v1499_v36 = vld [vmem:[#allocation6 + $0x20] sm:$0xff]  ;;  %v782_v19 = vand.u32 2147483647, %v718_v11  ;;  %v2502_v21 = vld [vmem:[#allocation6 + $0x538] sm:$0xff] }
  0x84   :  { %v214_v52 = vadd.f32 %v213_v60, %v3552_v29  ;;  %v2427_v39 = vmul.f32 %v1499_v36, %v2273_v54  ;;  %v545_v31 = vadd.f32 %v544_v28, %v3555_v27  ;;  %v2434_v49 = vmul.f32 %v1500_v61, %v2273_v54  ;;  %v2450_v61 = vld [vmem:[#allocation6 + $0x478] sm:$0xff]  ;;  %v2512_v6 = vld [vmem:[#allocation6 + $0x568] sm:$0xff] }
  0x85   :  { %v876_v51 = vrot.slane %v875_v32, 2  ;;  %v2438_v60 = vmul.f32 %v1485_v12, %v3558_v17  ;;  %v3559_v22 = vand.u32 2147483647, %v2090_v48  ;;  %v3560_v29 = vand.u32 2147483647, %v2178_v13  ;;  %3564 = vst [vmem:[#allocation41_spill] sm:$0xff] %v2450_v61 }
  0x86   :  { %3554 = vst [vmem:[#allocation14_spill] sm:$0xff] %v2427_v39  ;;  %3557 = vst [vmem:[#allocation38_spill] sm:$0xff] %v2434_v49  ;;  %v784_v56 = vand.u32 2147483647, %v720_v15  ;;  %v3562_v27 = vand.u32 2147483647, %v2287_v7  ;;  %v880_v17 = vadd.f32 %v782_v19, %v780_v62 }
  0x87   :  { %v1205_v9 = vadd.f32 %v1204_v2, %v3559_v22  ;;  %v215_v36 = vadd.f32 %v214_v52, %v3560_v29  ;;  %v877_v28 = vadd.f32 %v876_v51, %v875_v32  ;;  %v586_v48 = vmul.f32 %v1501_v57, %v2438_v60  ;;  %v2458_v32 = vld [vmem:[#allocation6 + $0x488] sm:$0xff]  ;;  %v2460_v7 = vld [vmem:[#allocation6 + $0x498] sm:$0xff] }
  0x88   :  { %v546_v11 = vadd.f32 %v545_v31, %v3562_v27  ;;  %v3565_v13 = vand.u32 2147483647, %v2097_v47  ;;  %v3566_v52 = vand.u32 2147483647, %v2180_v50  ;;  %3567 = vst [vmem:[#allocation42_spill] sm:$0xff] %v2458_v32  ;;  %3568 = vst [vmem:[#allocation43_spill] sm:$0xff] %v2460_v7 }
  0x89   :  { %v2462_v31 = vld [vmem:[#allocation6 + $0x4a8] sm:$0xff]  ;;  %v878_v22 = vrot.slane %v877_v28, 1  ;;  %v3570_v19 = vand.u32 2147483647, %v2289_v34  ;;  %v2467_v29 = vld [vmem:[#allocation6 + $0x4b8] sm:$0xff]  ;;  %v3574_v27 = vld [vmem:[#allocation15_spill] sm:$0xff] }
  0x8a   :  { %v1206_v2 = vadd.f32 %v1205_v9, %v3565_v13  ;;  %v216_v15 = vadd.f32 %v215_v36, %v3566_v52  ;;  %3569 = vst [vmem:[#allocation44_spill] sm:$0xff] %v2462_v31  ;;  %3571 = vst [vmem:[#allocation45_spill] sm:$0xff] %v2467_v29  ;;  %v2469_v57 = vld [vmem:[#allocation6 + $0x4c8] sm:$0xff]  ;;  %v2471_v47 = vld [vmem:[#allocation6 + $0x4d8] sm:$0xff]  ;;  %v2474_v9 = vadd.f32 %v880_v17, %v784_v56  ;;  %v3575_v13 = vand.u32 2147483647, %v3574_v27 }
  0x8b   :  { %v547_v62 = vadd.f32 %v546_v11, %v3570_v19  ;;  %3572 = vst [vmem:[#allocation46_spill] sm:$0xff] %v2469_v57  ;;  %3573 = vst [vmem:[#allocation47_spill] sm:$0xff] %v2471_v47  ;;  %v2477_v36 = vadd.f32 %v586_v48, %v2305_v38  ;;  %v3576_v51 = vand.u32 2147483647, %v2182_v20  ;;  %v2483_v11 = vld [vmem:[#allocation6 + $0x4e8] sm:$0xff]  ;;  %v2485_v19 = vld [vmem:[#allocation6 + $0x4f8] sm:$0xff]  ;;  %v879_v50 = vadd.f32 %v878_v22, %v877_v28 }
  0x8c   :  { %v1207_v52 = vadd.f32 %v1206_v2, %v3575_v13  ;;  %3577 = vst [vmem:[#allocation15_spill] sm:$0xff] %v2485_v19  ;;  %v2487_v12 = vld [vmem:[#allocation6 + $0x508] sm:$0xff]  ;;  %v3579_v56 = vand.u32 2147483647, %v2291_v24  ;;  %v2492_v38 = vld [vmem:[#allocation6 + $0x518] sm:$0xff]  ;;  %v3582_v13 = vld [vmem:[#allocation21_spill] sm:$0xff] }
  0x8d   :  { %v217_v34 = vadd.f32 %v216_v15, %v3576_v51  ;;  %3578 = vst [vmem:[#allocation48_spill] sm:$0xff] %v2487_v12  ;;  %v2494_v48 = vld [vmem:[#allocation6 + $0x528] sm:$0xff]  ;;  %v3583_v3 = vand.u32 2147483647, %v3582_v13  ;;  %v2506_v24 = vld [vmem:[#allocation6 + $0x558] sm:$0xff] }
  0x8e   :  { %v548_v17 = vadd.f32 %v547_v62, %v3579_v56  ;;  %v3580_v15 = vld [vmem:[#allocation16_spill] sm:$0xff]  ;;  %v917_v56 = vmax.f32 %v879_v50, 1e-12  ;;  %v3584_v2 = vand.u32 2147483647, %v2296_v23  ;;  %v3587_v49 = vld [vmem:[#allocation22_spill] sm:$0xff] }
  0x8f   :  { %v3581_v51 = vand.u32 2147483647, %v3580_v15  ;;  %v218_v54 = vadd.f32 %v217_v34, %v3583_v3  ;;  %v2504_v28 = vld [vmem:[#allocation6 + $0x548] sm:$0xff]  ;;  %v3585_v15 = vld [vmem:[#allocation17_spill] sm:$0xff]  ;;  %v3588_v35 = vand.u32 2147483647, %v3587_v49 }
  0x90   :  { %v549_v20 = vadd.f32 %v548_v17, %v3584_v2  ;;  %v2522_v39 = vld [vmem:[#allocation6 + $0x588] sm:$0xff]  ;;  %v2524_v50 = vld [vmem:[#allocation6 + $0x598] sm:$0xff]  ;;  %1486 = vrcp.f32 %v917_v56  ;;  %v3591_v3 = vand.u32 2147483647, %v2298_v43  ;;  %v3596_v58 = vand.u32 2147483647, %v2198_v37 }
  0x91   :  { %v1208_v27 = vadd.f32 %v1207_v52, %v3581_v51  ;;  %v2514_v52 = vld [vmem:[#allocation6 + $0x578] sm:$0xff]  ;;  %v3586_v51 = vand.u32 2147483647, %v3585_v15  ;;  %v219_v22 = vadd.f32 %v218_v54, %v3588_v35  ;;  %3589 = vst [vmem:[#allocation16_spill] sm:$0xff] %v2524_v50  ;;  %v2526_v23 = vld [vmem:[#allocation6 + $0x5a8] sm:$0xff] }
  0x92   :  { %3590 = vst [vmem:[#allocation21_spill] sm:$0xff] %v2526_v23  ;;  %v550_v34 = vadd.f32 %v549_v20, %v3591_v3  ;;  %v2532_v62 = vld [vmem:[#allocation6 + $0x5b8] sm:$0xff]  ;;  %v2544_v56 = vld [vmem:[#allocation6 + $0x5e8] sm:$0xff]  ;;  %v3599_v3 = vand.u32 2147483647, %v2300_v44 }
  0x93   :  { %v1209_v13 = vadd.f32 %v1208_v27, %v3586_v51  ;;  %3592 = vst [vmem:[#allocation17_spill] sm:$0xff] %v2532_v62  ;;  %v2534_v27 = vld [vmem:[#allocation6 + $0x5c8] sm:$0xff]  ;;  %v3594_v49 = vld [vmem:[#allocation18_spill] sm:$0xff]  ;;  %v220_v17 = vadd.f32 %v219_v22, %v3596_v58  ;;  %3598 = vst [vmem:[#allocation49_spill] sm:$0xff] %v2544_v56  ;;  %v3602_v22 = vand.u32 2147483647, %v2200_v26 }
  0x94   :  { %3593 = vst [vmem:[#allocation22_spill] sm:$0xff] %v2534_v27  ;;  %v3595_v15 = vand.u32 2147483647, %v3594_v49  ;;  %v2542_v47 = vld [vmem:[#allocation6 + $0x5d8] sm:$0xff]  ;;  %v551_v2 = vadd.f32 %v550_v34, %v3599_v3  ;;  %v3600_v49 = vld [vmem:[#allocation19_spill] sm:$0xff]  ;;  %v2561_v44 = vld [vmem:[#allocation6 + $0x608] sm:$0xff] }
  0x95   :  { %3597 = vst [vmem:[#allocation18_spill] sm:$0xff] %v2542_v47  ;;  %v3601_v37 = vand.u32 2147483647, %v3600_v49  ;;  %v2557_v12 = vld [vmem:[#allocation6 + $0x5f8] sm:$0xff]  ;;  %3604 = vst [vmem:[#allocation50_spill] sm:$0xff] %v2561_v44  ;;  %v3606_v49 = vld [vmem:[#allocation20_spill] sm:$0xff] }
  0x96   :  { %v1210_v51 = vadd.f32 %v1209_v13, %v3595_v15  ;;  %v221_v15 = vadd.f32 %v220_v17, %v3602_v22  ;;  %3603 = vst [vmem:[#allocation19_spill] sm:$0xff] %v2557_v12  ;;  %v3605_v34 = vand.u32 2147483647, %v2311_v40  ;;  %v3607_v26 = vand.u32 2147483647, %v3606_v49  ;;  %v2574_v54 = vld [vmem:[#allocation6 + $0x618] sm:$0xff] }
  0x97   :  { %3609 = vst [vmem:[#allocation20_spill] sm:$0xff] %v2574_v54  ;;  %v2576_v40 = vld [vmem:[#allocation6 + $0x628] sm:$0xff]  ;;  %v2588_v20 = vld [vmem:[#allocation6 + $0x638] sm:$0xff]  ;;  %v1119_v43 = vand.u32 2147483647, %v2561_v44 }
  0x98   :  { %v1211_v58 = vadd.f32 %v1210_v51, %v3601_v37  ;;  %v552_v3 = vadd.f32 %v551_v2, %v3605_v34  ;;  %v3608_v37 = vand.u32 2147483647, %v2202_v46  ;;  %3610 = vst [vmem:[#allocation51_spill] sm:$0xff] %v2576_v40  ;;  %v3611_v2 = vand.u32 2147483647, %v2313_v4  ;;  %3614 = vst [vmem:[#allocation52_spill] sm:$0xff] %v2588_v20 }
  0x99   :  { %v3612_v46 = vand.u32 2147483647, %v2208_v10  ;;  %v3615_v4 = vand.u32 2147483647, %v2315_v55  ;;  %v1121_v51 = vand.u32 2147483647, %v2574_v54 }
  0x9a   :  { %v1212_v17 = vadd.f32 %v1211_v58, %v3607_v26  ;;  %v222_v22 = vadd.f32 %v221_v15, %v3608_v37  ;;  %v553_v34 = vadd.f32 %v552_v3, %v3611_v2  ;;  %v3613_v26 = vand.u32 2147483647, %v2424_v41  ;;  %v2593_v2 = vld [vmem:[#allocation6 + $0x648] sm:$0xff]  ;;  %v1502_v58 = vld [vmem:[#allocation6 + $0x210] sm:$0xff]  ;;  %v1503_v10 = vld [vmem:[#allocation6 + $0x220] sm:$0xff] }
  0x9b   :  { %3616 = vst [vmem:[#allocation53_spill] sm:$0xff] %v2593_v2  ;;  %v588_v13 = vmul.f32 %v1502_v58, %v2438_v60  ;;  %v3618_v35 = vand.u32 2147483647, %v2431_v63  ;;  %v2604_v55 = vld [vmem:[#allocation6 + $0x658] sm:$0xff]  ;;  %v3622_v58 = vand.u32 2147483647, %v2319_v30 }
  0x9c   :  { %v1213_v49 = vrot.slane %v1212_v17, 4  ;;  %v223_v15 = vadd.f32 %v222_v22, %v3612_v46  ;;  %v882_v37 = vadd.f32 %v2474_v9, %v3613_v26  ;;  %v554_v3 = vadd.f32 %v553_v34, %v3615_v4  ;;  %3619 = vst [vmem:[#allocation54_spill] sm:$0xff] %v2604_v55  ;;  %v2606_v34 = vld [vmem:[#allocation6 + $0x668] sm:$0xff]  ;;  %v2608_v4 = vld [vmem:[#allocation6 + $0x678] sm:$0xff] }
  0x9d   :  { %v2598_v22 = vmul.f32 %v1503_v10, %v2438_v60  ;;  %v3617_v9 = vand.u32 2147483647, %v2210_v42  ;;  %3620 = vst [vmem:[#allocation55_spill] sm:$0xff] %v2606_v34  ;;  %3621 = vst [vmem:[#allocation56_spill] sm:$0xff] %v2608_v4  ;;  %v2613_v10 = vld [vmem:[#allocation6 + $0x688] sm:$0xff]  ;;  %v2616_v42 = vadd.f32 %v1121_v51, %v1119_v43  ;;  %v2625_v54 = vld [vmem:[#allocation6 + $0x698] sm:$0xff] }
  0x9e   :  { %v1214_v46 = vadd.f32 %v1213_v49, %v1212_v17  ;;  %v883_v44 = vadd.f32 %v882_v37, %v3618_v35  ;;  %v555_v41 = vadd.f32 %v554_v3, %v3622_v58  ;;  %v2619_v49 = vadd.f32 %v588_v13, %v2418_v33  ;;  %v2627_v30 = vld [vmem:[#allocation6 + $0x6a8] sm:$0xff]  ;;  %v2629_v3 = vld [vmem:[#allocation6 + $0x6b8] sm:$0xff]  ;;  %v1487_v58 = vpop.eup %1486 }
  0x9f   :  { %v224_v26 = vadd.f32 %v223_v15, %v3617_v9  ;;  %v3623_v15 = vand.u32 2147483647, %v2217_v45  ;;  %v3624_v9 = vand.u32 2147483647, %v2444_v18  ;;  %v3625_v51 = vand.u32 2147483647, %v2321_v0 }
  0xa0   :  { %v1215_v35 = vrot.slane %v1214_v46, 2  ;;  %v3627_v17 = vand.u32 2147483647, %v2448_v8  ;;  %v2641_v12 = vld [vmem:[#allocation6 + $0x6c8] sm:$0xff]  ;;  %v2643_v43 = vld [vmem:[#allocation6 + $0x6d8] sm:$0xff] }
  0xa1   :  { %v225_v37 = vadd.f32 %v224_v26, %v3623_v15  ;;  %v884_v63 = vadd.f32 %v883_v44, %v3624_v9  ;;  %v556_v33 = vadd.f32 %v555_v41, %v3625_v51  ;;  %v3626_v15 = vand.u32 2147483647, %v2219_v14  ;;  %v2645_v0 = vld [vmem:[#allocation6 + $0x6e8] sm:$0xff] }
  0xa2   :  { %v1216_v44 = vadd.f32 %v1215_v35, %v1214_v46  ;;  %3628 = vst [vmem:[#allocation57_spill] sm:$0xff] %v2645_v0  ;;  %v3629_v51 = vstv %s1942_s19  ;;  %v3630_v26 = vand.u32 2147483647, %v2329_v5  ;;  %v2654_v35 = vld [vmem:[#allocation6 + $0x6f8] sm:$0xff]  ;;  %v2656_v14 = vld [vmem:[#allocation6 + $0x708] sm:$0xff] }
  0xa3   :  { %v226_v9 = vadd.f32 %v225_v37, %v3626_v15  ;;  %v885_v18 = vadd.f32 %v884_v63, %v3627_v17  ;;  %v2650_v45 = vmul.f32 %v1487_v58, %v3629_v51  ;;  %3631 = vst [vmem:[#allocation58_spill] sm:$0xff] %v2654_v35  ;;  %3632 = vst [vmem:[#allocation59_spill] sm:$0xff] %v2656_v14  ;;  %v3633_v15 = vld [vmem:[#allocation23_spill] sm:$0xff]  ;;  %v3635_v41 = vand.u32 2147483647, %v2450_v61  ;;  %v2664_v58 = vld [vmem:[#allocation6 + $0x718] sm:$0xff] }
  0xa4   :  { %v557_v46 = vadd.f32 %v556_v33, %v3630_v26  ;;  %v1217_v37 = vrot.slane %v1216_v44, 1  ;;  %v3634_v13 = vand.u32 2147483647, %v3633_v15  ;;  %3636 = vst [vmem:[#allocation23_spill] sm:$0xff] %v2664_v58  ;;  %v2666_v51 = vld [vmem:[#allocation6 + $0x728] sm:$0xff]  ;;  %v2668_v5 = vld [vmem:[#allocation6 + $0x738] sm:$0xff] }
  0xa5   :  { %v886_v56 = vadd.f32 %v885_v18, %v3635_v41  ;;  %3637 = vst [vmem:[#allocation60_spill] sm:$0xff] %v2666_v51  ;;  %3638 = vst [vmem:[#allocation61_spill] sm:$0xff] %v2668_v5  ;;  %v1504_v26 = vld [vmem:[#allocation6 + $0x400] sm:$0xff]  ;;  %v3639_v17 = vand.u32 2147483647, %v2331_v59  ;;  %v2674_v27 = vld [vmem:[#allocation6 + $0x748] sm:$0xff] }
  0xa6   :  { %v227_v8 = vadd.f32 %v226_v9, %v3634_v13  ;;  %v925_v63 = vmul.f32 %v1504_v26, %v2650_v45  ;;  %3640 = vst [vmem:[#allocation62_spill] sm:$0xff] %v2674_v27  ;;  %v2676_v13 = vld [vmem:[#allocation6 + $0x758] sm:$0xff]  ;;  %v1218_v41 = vadd.f32 %v1217_v37, %v1216_v44  ;;  %v3642_v15 = vand.u32 2147483647, %v2227_v25  ;;  %v2684_v23 = vld [vmem:[#allocation6 + $0x768] sm:$0xff]  ;;  %v3646_v18 = vld [vmem:[#allocation29_spill] sm:$0xff] }
  0xa7   :  { %v558_v47 = vadd.f32 %v557_v46, %v3639_v17  ;;  %3641 = vst [vmem:[#allocation63_spill] sm:$0xff] %v2676_v13  ;;  %v3643_v33 = vand.u32 2147483647, %v2458_v32  ;;  %3644 = vst [vmem:[#allocation64_spill] sm:$0xff] %v2684_v23  ;;  %v2686_v26 = vld [vmem:[#allocation6 + $0x778] sm:$0xff]  ;;  %v2688_v59 = vld [vmem:[#allocation6 + $0x788] sm:$0xff] }
  0xa8   :  { %v228_v61 = vadd.f32 %v227_v8, %v3642_v15  ;;  %3645 = vst [vmem:[#allocation65_spill] sm:$0xff] %v2686_v26  ;;  %v2692_v17 = vadd.f32 %v925_v63, %v2477_v36  ;;  %v3647_v9 = vand.u32 2147483647, %v3646_v18  ;;  %v2696_v37 = vld [vmem:[#allocation6 + $0x798] sm:$0xff]  ;;  %v2698_v25 = vld [vmem:[#allocation6 + $0x7a8] sm:$0xff] }
  0xa9   :  { %v887_v62 = vadd.f32 %v886_v56, %v3643_v33  ;;  %v1256_v33 = vmax.f32 %v1218_v41, 1e-12  ;;  %v3648_v15 = vld [vmem:[#allocation24_spill] sm:$0xff]  ;;  %v3650_v46 = vand.u32 2147483647, %v2460_v7  ;;  %v2706_v36 = vld [vmem:[#allocation6 + $0x7b8] sm:$0xff] }
  0xaa   :  { %v559_v44 = vadd.f32 %v558_v47, %v3647_v9  ;;  %v3649_v32 = vand.u32 2147483647, %v3648_v15  ;;  %v2708_v63 = vld [vmem:[#allocation6 + $0x7c8] sm:$0xff]  ;;  %v3651_v18 = vand.u32 2147483647, %v2338_v16  ;;  %v2720_v7 = vld [vmem:[#allocation6 + $0x7d8] sm:$0xff] }
  0xab   :  { %v888_v0 = vadd.f32 %v887_v62, %v3650_v46  ;;  %1488 = vrcp.f32 %v1256_v33  ;;  %v3654_v62 = vand.u32 2147483647, %v2462_v31  ;;  %3655 = vst [vmem:[#allocation29_spill] sm:$0xff] %v2720_v7  ;;  %v2722_v14 = vld [vmem:[#allocation6 + $0x7e8] sm:$0xff]  ;;  %v2724_v47 = vld [vmem:[#allocation6 + $0x7f8] sm:$0xff] }
  0xac   :  { %v229_v50 = vadd.f32 %v228_v61, %v3649_v32  ;;  %v560_v9 = vadd.f32 %v559_v44, %v3651_v18  ;;  %v3652_v61 = vld [vmem:[#allocation25_spill] sm:$0xff]  ;;  %3656 = vst [vmem:[#allocation24_spill] sm:$0xff] %v2722_v14  ;;  %v3658_v44 = vand.u32 2147483647, %v2340_v1  ;;  %v3662_v16 = vand.u32 2147483647, %v2349_v53 }
  0xad   :  { %v3653_v32 = vand.u32 2147483647, %v3652_v61  ;;  %v889_v46 = vadd.f32 %v888_v0, %v3654_v62  ;;  %3657 = vst [vmem:[#allocation25_spill] sm:$0xff] %v2724_v47  ;;  %v3659_v61 = vld [vmem:[#allocation26_spill] sm:$0xff]  ;;  %v3661_v62 = vand.u32 2147483647, %v2467_v29 }
  0xae   :  { %v561_v18 = vadd.f32 %v560_v9, %v3658_v44  ;;  %v3666_v31 = vld [vmem:[#allocation30_spill] sm:$0xff]  ;;  %v1505_v44 = vld [vmem:[#allocation6 + $0x410] sm:$0xff]  ;;  %v3677_v14 = vld [vmem:[#allocation32_spill] sm:$0xff] }
  0xaf   :  { %v230_v15 = vadd.f32 %v229_v50, %v3653_v32  ;;  %v3660_v32 = vand.u32 2147483647, %v3659_v61  ;;  %v890_v56 = vadd.f32 %v889_v46, %v3661_v62  ;;  %v3663_v50 = vld [vmem:[#allocation27_spill] sm:$0xff]  ;;  %v3667_v8 = vand.u32 2147483647, %v3666_v31  ;;  %v3669_v9 = vld [vmem:[#allocation14_spill] sm:$0xff] }
  0xb0   :  { %v562_v1 = vadd.f32 %v561_v18, %v3662_v16  ;;  %v3664_v41 = vand.u32 2147483647, %v3663_v50  ;;  %v3668_v16 = vand.u32 2147483647, %v2576_v40  ;;  %v927_v33 = vmul.f32 %v1505_v44, %v2650_v45  ;;  %v1506_v46 = vld [vmem:[#allocation6 + $0x420] sm:$0xff]  ;;  %v1508_v29 = vld [vmem:[#allocation6 + $0x430] sm:$0xff] }
  0xb1   :  { %v231_v0 = vadd.f32 %v230_v15, %v3660_v32  ;;  %v3665_v15 = vand.u32 2147483647, %v2469_v57  ;;  %v929_v62 = vmul.f32 %v1506_v46, %v2650_v45  ;;  %v1507_v57 = vld [vmem:[#allocation6 + $0x230] sm:$0xff]  ;;  %v3676_v46 = vld [vmem:[#allocation38_spill] sm:$0xff] }
  0xb2   :  { %v563_v53 = vadd.f32 %v562_v1, %v3667_v8  ;;  %v1220_v18 = vadd.f32 %v2616_v42, %v3668_v16  ;;  %v592_v31 = vmul.f32 %v1507_v57, %v2438_v60  ;;  %v3672_v8 = vld [vmem:[#allocation31_spill] sm:$0xff]  ;;  %v3674_v42 = vand.u32 2147483647, %v2588_v20 }
  0xb3   :  { %v232_v61 = vadd.f32 %v231_v0, %v3664_v41  ;;  %v891_v32 = vadd.f32 %v890_v56, %v3665_v15  ;;  %v654_v41 = vadd.f32 %v2598_v22, %v3669_v9  ;;  %v3670_v0 = vld [vmem:[#allocation47_spill] sm:$0xff]  ;;  %v3673_v1 = vand.u32 2147483647, %v3672_v8 }
  0xb4   :  { %v3671_v56 = vand.u32 2147483647, %v3670_v0  ;;  %v1221_v16 = vadd.f32 %v1220_v18, %v3674_v42  ;;  %v991_v44 = vadd.f32 %v927_v33, %v2619_v49  ;;  %v931_v22 = vmul.f32 %v1508_v29, %v2650_v45  ;;  %v3680_v18 = vld [vmem:[#allocation28_spill] sm:$0xff]  ;;  %v1510_v49 = vld [vmem:[#allocation6 + $0x240] sm:$0xff] }
  0xb5   :  { %v233_v50 = vrot.slane %v232_v61, 4  ;;  %v564_v40 = vadd.f32 %v563_v53, %v3673_v1  ;;  %v993_v0 = vadd.f32 %v929_v62, %v654_v41  ;;  %v656_v47 = vadd.f32 %v592_v31, %v3676_v46  ;;  %v1509_v1 = vld [vmem:[#allocation6 + $0x40] sm:$0xff]  ;;  %v3682_v31 = vld [vmem:[#allocation33_spill] sm:$0xff] }
  0xb6   :  { %v892_v15 = vadd.f32 %v891_v32, %v3671_v56  ;;  %v3675_v32 = vand.u32 2147483647, %v2483_v11  ;;  %v3678_v57 = vand.u32 2147483647, %v3677_v14  ;;  %v3679_v53 = vand.u32 2147483647, %v2593_v2 }
  0xb7   :  { %v234_v9 = vadd.f32 %v233_v50, %v232_v61  ;;  %v255_v42 = vmul.f32 %v1509_v1, %v3680_v18  ;;  %v594_v33 = vmul.f32 %v1510_v49, %v2438_v60  ;;  %v3681_v61 = vand.u32 2147483647, %v2485_v19  ;;  %v1511_v62 = vld [vmem:[#allocation6 + $0x440] sm:$0xff]  ;;  %v3685_v49 = vld [vmem:[#allocation48_spill] sm:$0xff] }
  0xb8   :  { %v893_v56 = vadd.f32 %v892_v15, %v3675_v32  ;;  %v565_v7 = vadd.f32 %v564_v40, %v3678_v57  ;;  %v1222_v8 = vadd.f32 %v1221_v16, %v3679_v53  ;;  %v995_v15 = vadd.f32 %v931_v22, %v656_v47  ;;  %v1512_v57 = vld [vmem:[#allocation6 + $0x50] sm:$0xff] }
  0xb9   :  { %v235_v29 = vrot.slane %v234_v9, 2  ;;  %v933_v41 = vmul.f32 %v1511_v62, %v2650_v45  ;;  %v3683_v14 = vand.u32 2147483647, %v3682_v31  ;;  %v3684_v32 = vand.u32 2147483647, %v2604_v55  ;;  %v1514_v22 = vld [vmem:[#allocation6 + $0x450] sm:$0xff]  ;;  %v1489_v62 = vpop.eup %1488 }
  0xba   :  { %v894_v50 = vadd.f32 %v893_v56, %v3681_v61  ;;  %v658_v46 = vadd.f32 %v594_v33, %v255_v42  ;;  %v257_v53 = vmul.f32 %v1512_v57, %v3680_v18  ;;  %v3686_v2 = vand.u32 2147483647, %v3685_v49  ;;  %v1513_v56 = vld [vmem:[#allocation6 + $0x250] sm:$0xff] }
  0xbb   :  { %v566_v40 = vadd.f32 %v565_v7, %v3683_v14  ;;  %v1223_v16 = vadd.f32 %v1222_v8, %v3684_v32  ;;  %v236_v1 = vadd.f32 %v235_v29, %v234_v9  ;;  %v596_v47 = vmul.f32 %v1513_v56, %v2438_v60  ;;  %v3687_v7 = vld [vmem:[#allocation34_spill] sm:$0xff]  ;;  %v1515_v32 = vld [vmem:[#allocation6 + $0x60] sm:$0xff] }
  0xbc   :  { %v895_v20 = vadd.f32 %v894_v50, %v3686_v2  ;;  %v935_v61 = vmul.f32 %v1514_v22, %v2650_v45  ;;  %v3688_v31 = vand.u32 2147483647, %v3687_v7  ;;  %v3689_v8 = vand.u32 2147483647, %v2606_v34  ;;  %v3692_v22 = vld [vmem:[#allocation35_spill] sm:$0xff] }
  0xbd   :  { %v997_v33 = vadd.f32 %v933_v41, %v658_v46  ;;  %v259_v9 = vmul.f32 %v1515_v32, %v3680_v18  ;;  %v3690_v29 = vstv %s2051_s20  ;;  %v237_v2 = vrot.slane %v236_v1, 1 }
  0xbe   :  { %v567_v14 = vadd.f32 %v566_v40, %v3688_v31  ;;  %v1224_v42 = vadd.f32 %v1223_v16, %v3689_v8  ;;  %v2795_v57 = vmul.f32 %v1489_v62, %v3690_v29  ;;  %v3691_v50 = vand.u32 2147483647, %v2492_v38  ;;  %v1516_v31 = vld [vmem:[#allocation6 + $0x260] sm:$0xff] }
  0xbf   :  { %v660_v55 = vadd.f32 %v596_v47, %v257_v53  ;;  %v3693_v49 = vand.u32 2147483647, %v3692_v22  ;;  %v3694_v40 = vand.u32 2147483647, %v2608_v4  ;;  %v598_v41 = vmul.f32 %v1516_v31, %v2438_v60  ;;  %v1517_v16 = vld [vmem:[#allocation6 + $0x460] sm:$0xff]  ;;  %v1519_v53 = vld [vmem:[#allocation6 + $0x610] sm:$0xff] }
  0xc0   :  { %v896_v56 = vadd.f32 %v895_v20, %v3691_v50  ;;  %v937_v46 = vmul.f32 %v1517_v16, %v2650_v45  ;;  %v1518_v8 = vld [vmem:[#allocation6 + $0x600] sm:$0xff]  ;;  %v238_v32 = vadd.f32 %v237_v2, %v236_v1  ;;  %v3695_v29 = vand.u32 2147483647, %v2494_v48  ;;  %v1521_v16 = vld [vmem:[#allocation6 + $0x630] sm:$0xff] }
  0xc1   :  { %v568_v19 = vadd.f32 %v567_v14, %v3693_v49  ;;  %v1225_v7 = vadd.f32 %v1224_v42, %v3694_v40  ;;  %v1264_v62 = vmul.f32 %v1518_v8, %v2795_v57  ;;  %v1266_v47 = vmul.f32 %v1519_v53, %v2795_v57  ;;  %v3696_v49 = vld [vmem:[#allocation11_spill] sm:$0xff]  ;;  %v3700_v53 = vld [vmem:[#allocation36_spill] sm:$0xff] }
  0xc2   :  { %v897_v20 = vadd.f32 %v896_v56, %v3695_v29  ;;  %v3697_v14 = vand.u32 2147483647, %v3696_v49  ;;  %v3698_v42 = vand.u32 2147483647, %v2613_v10  ;;  %v1520_v40 = vld [vmem:[#allocation6 + $0x620] sm:$0xff]  ;;  %v1270_v4 = vmul.f32 %v1521_v16, %v2795_v57 }
  0xc3   :  { %v1268_v31 = vmul.f32 %v1520_v40, %v2795_v57  ;;  %v1328_v1 = vadd.f32 %v1264_v62, %v2692_v17  ;;  %v240_v2 = vmax.f32 %v238_v32, 1e-12  ;;  %v3699_v56 = vand.u32 2147483647, %v2502_v21  ;;  %v1522_v17 = vld [vmem:[#allocation6 + $0x640] sm:$0xff] }
  0xc4   :  { %v569_v50 = vadd.f32 %v568_v19, %v3697_v14  ;;  %v1226_v22 = vadd.f32 %v1225_v7, %v3698_v42  ;;  %v1330_v29 = vadd.f32 %v1266_v47, %v991_v44  ;;  %v3701_v34 = vand.u32 2147483647, %v3700_v53 }
  0xc5   :  { %v898_v8 = vadd.f32 %v897_v20, %v3699_v56  ;;  %v3702_v19 = vand.u32 2147483647, %v2625_v54  ;;  %v1332_v7 = vadd.f32 %v1268_v31, %v993_v0  ;;  %v1334_v42 = vadd.f32 %v1270_v4, %v995_v15  ;;  %1392 = vst [vmem:[#allocation7] sm:$0xff] %v1328_v1  ;;  %v3704_v20 = vld [vmem:[#allocation12_spill] sm:$0xff]  ;;  %v1523_v0 = vld [vmem:[#allocation6 + $0x650] sm:$0xff]  ;;  %v1524_v1 = vld [vmem:[#allocation6 + $0x660] sm:$0xff] }
  0xc6   :  { %v570_v49 = vadd.f32 %v569_v50, %v3701_v34  ;;  %1490 = vrcp.f32 %v240_v2  ;;  %v3703_v40 = vand.u32 2147483647, %v2504_v28  ;;  %1394 = vst [vmem:[#allocation7 + $0x10] sm:$0xff] %v1330_v29  ;;  %v1272_v62 = vmul.f32 %v1522_v17, %v2795_v57 }
  0xc7   :  { %v1227_v14 = vadd.f32 %v1226_v22, %v3702_v19  ;;  %v999_v32 = vadd.f32 %v935_v61, %v660_v55  ;;  %v3705_v44 = vand.u32 2147483647, %v3704_v20  ;;  %v3706_v34 = vand.u32 2147483647, %v2627_v30  ;;  %1396 = vst [vmem:[#allocation7 + $0x20] sm:$0xff] %v1332_v7  ;;  %1398 = vst [vmem:[#allocation7 + $0x30] sm:$0xff] %v1334_v42 }
  0xc8   :  { %v899_v16 = vadd.f32 %v898_v8, %v3703_v40  ;;  %v1274_v4 = vmul.f32 %v1523_v0, %v2795_v57  ;;  %v662_v15 = vadd.f32 %v598_v41, %v259_v9  ;;  %v3707_v28 = vand.u32 2147483647, %v2506_v24  ;;  %v1525_v55 = vld [vmem:[#allocation6 + $0x70] sm:$0xff]  ;;  %v1531_v0 = vld [vmem:[#allocation6 + $0x480] sm:$0xff] }
  0xc9   :  { %v571_v47 = vadd.f32 %v570_v49, %v3705_v44  ;;  %v1228_v50 = vadd.f32 %v1227_v14, %v3706_v34  ;;  %v1336_v31 = vadd.f32 %v1272_v62, %v997_v33  ;;  %v1276_v2 = vmul.f32 %v1524_v1, %v2795_v57  ;;  %v1526_v9 = vld [vmem:[#allocation6 + $0x270] sm:$0xff]  ;;  %v1530_v34 = vld [vmem:[#allocation6 + $0x280] sm:$0xff] }
  0xca   :  { %v900_v22 = vadd.f32 %v899_v16, %v3707_v28  ;;  %v261_v61 = vmul.f32 %v1525_v55, %v3680_v18  ;;  %v3708_v8 = vand.u32 2147483647, %v2629_v3  ;;  %v1338_v53 = vadd.f32 %v1274_v4, %v999_v32  ;;  %v1527_v33 = vld [vmem:[#allocation6 + $0x470] sm:$0xff] }
  0xcb   :  { %v572_v56 = vrot.slane %v571_v47, 4  ;;  %v1001_v49 = vadd.f32 %v937_v46, %v662_v15  ;;  %v3709_v19 = vand.u32 2147483647, %v2512_v6  ;;  %1400 = vst [vmem:[#allocation7 + $0x40] sm:$0xff] %v1336_v31  ;;  %v600_v24 = vmul.f32 %v1526_v9, %v2438_v60  ;;  %v1528_v7 = vld [vmem:[#allocation6 + $0x670] sm:$0xff]  ;;  %v1529_v46 = vld [vmem:[#allocation6 + $0x80] sm:$0xff] }
  0xcc   :  { %v1229_v29 = vadd.f32 %v1228_v50, %v3708_v8  ;;  %v939_v41 = vmul.f32 %v1527_v33, %v2650_v45  ;;  %v1278_v42 = vmul.f32 %v1528_v7, %v2795_v57  ;;  %v3710_v16 = vand.u32 2147483647, %v2641_v12  ;;  %1402 = vst [vmem:[#allocation7 + $0x50] sm:$0xff] %v1338_v53  ;;  %v1533_v1 = vld [vmem:[#allocation6 + $0x90] sm:$0xff] }
  0xcd   :  { %v901_v14 = vadd.f32 %v900_v22, %v3709_v19  ;;  %v573_v40 = vadd.f32 %v572_v56, %v571_v47  ;;  %v1340_v62 = vadd.f32 %v1276_v2, %v1001_v49  ;;  %v263_v6 = vmul.f32 %v1529_v46, %v3680_v18  ;;  %v1532_v22 = vld [vmem:[#allocation6 + $0x680] sm:$0xff]  ;;  %v1534_v8 = vld [vmem:[#allocation6 + $0x290] sm:$0xff] }
  0xce   :  { %v1230_v17 = vadd.f32 %v1229_v29, %v3710_v16  ;;  %v3711_v32 = vand.u32 2147483647, %v2514_v52  ;;  %v664_v44 = vadd.f32 %v600_v24, %v261_v61  ;;  %v602_v50 = vmul.f32 %v1530_v34, %v2438_v60  ;;  %v3714_v49 = vld [vmem:[#allocation57_spill] sm:$0xff]  ;;  %v3716_v16 = vld [vmem:[#allocation16_spill] sm:$0xff]  ;;  %v1538_v34 = vld [vmem:[#allocation6 + $0x2a0] sm:$0xff] }
  0xcf   :  { %v941_v4 = vmul.f32 %v1531_v0, %v2650_v45  ;;  %v574_v15 = vrot.slane %v573_v40, 2  ;;  %v3712_v47 = vand.u32 2147483647, %v2643_v43  ;;  %1404 = vst [vmem:[#allocation7 + $0x60] sm:$0xff] %v1340_v62  ;;  %v1280_v31 = vmul.f32 %v1532_v22, %v2795_v57  ;;  %v1535_v9 = vld [vmem:[#allocation6 + $0x490] sm:$0xff] }
  0xd0   :  { %v902_v20 = vadd.f32 %v901_v14, %v3711_v32  ;;  %v265_v2 = vmul.f32 %v1533_v1, %v3680_v18  ;;  %v3713_v52 = vand.u32 2147483647, %v2522_v39  ;;  %v1003_v61 = vadd.f32 %v939_v41, %v664_v44  ;;  %v1536_v33 = vld [vmem:[#allocation6 + $0x690] sm:$0xff] }
  0xd1   :  { %v1231_v28 = vadd.f32 %v1230_v17, %v3712_v47  ;;  %v666_v56 = vadd.f32 %v602_v50, %v263_v6  ;;  %v604_v29 = vmul.f32 %v1534_v8, %v2438_v60  ;;  %v575_v53 = vadd.f32 %v574_v15, %v573_v40  ;;  %v1537_v40 = vld [vmem:[#allocation6 + $0xa0] sm:$0xff]  ;;  %v3719_v0 = vld [vmem:[#allocation21_spill] sm:$0xff] }
  0xd2   :  { %v903_v55 = vadd.f32 %v902_v20, %v3713_v52  ;;  %v3715_v19 = vand.u32 2147483647, %v3714_v49  ;;  %v943_v24 = vmul.f32 %v1535_v9, %v2650_v45  ;;  %v1282_v7 = vmul.f32 %v1536_v33, %v2795_v57  ;;  %v3721_v52 = vld [vmem:[#allocation59_spill] sm:$0xff]  ;;  %v3724_v9 = vld [vmem:[#allocation17_spill] sm:$0xff] }
  0xd3   :  { %v3717_v17 = vand.u32 2147483647, %v3716_v16  ;;  %v1342_v39 = vadd.f32 %v1278_v42, %v1003_v61  ;;  %v1005_v46 = vadd.f32 %v941_v4, %v666_v56  ;;  %v668_v41 = vadd.f32 %v604_v29, %v265_v2  ;;  %v1539_v42 = vld [vmem:[#allocation6 + $0x4a0] sm:$0xff]  ;;  %v1491_v1 = vpop.eup %1490 }
  0xd4   :  { %v1232_v14 = vadd.f32 %v1231_v28, %v3715_v19  ;;  %v576_v6 = vrot.slane %v575_v53, 1  ;;  %v3718_v32 = vand.u32 2147483647, %v2654_v35  ;;  %v267_v44 = vmul.f32 %v1537_v40, %v3680_v18  ;;  %v1540_v8 = vld [vmem:[#allocation6 + $0x6a0] sm:$0xff]  ;;  %v3727_v40 = vld [vmem:[#allocation22_spill] sm:$0xff]  ;;  %v1619_v35 = vld [vmem:[#allocation6 + $0x428] sm:$0xff] }
  0xd5   :  { %v904_v62 = vadd.f32 %v903_v55, %v3717_v17  ;;  %v606_v50 = vmul.f32 %v1538_v34, %v2438_v60  ;;  %v3720_v15 = vand.u32 2147483647, %v3719_v0  ;;  %1406 = vst [vmem:[#allocation7 + $0x70] sm:$0xff] %v1342_v39  ;;  %v1344_v28 = vadd.f32 %v1280_v31, %v1005_v46  ;;  %v1545_v0 = vld [vmem:[#allocation6 + $0x28] sm:$0xff] }
  0xd6   :  { %v1233_v20 = vadd.f32 %v1232_v14, %v3718_v32  ;;  %v1007_v22 = vadd.f32 %v943_v24, %v668_v41  ;;  %v945_v4 = vmul.f32 %v1539_v42, %v2650_v45  ;;  %v577_v2 = vadd.f32 %v576_v6, %v575_v53  ;;  %v1541_v24 = vld [vmem:[#allocation6 + $0xb0] sm:$0xff]  ;;  %v1543_v32 = vld [vmem:[#allocation6 + $0x8] sm:$0xff] }
  0xd7   :  { %v905_v47 = vadd.f32 %v904_v62, %v3720_v15  ;;  %v3722_v55 = vand.u32 2147483647, %v3721_v52  ;;  %v670_v56 = vadd.f32 %v606_v50, %v267_v44  ;;  %v1284_v29 = vmul.f32 %v1540_v8, %v2795_v57  ;;  %1408 = vst [vmem:[#allocation7 + $0x80] sm:$0xff] %v1344_v28  ;;  %v1542_v41 = vld [vmem:[#allocation6 + $0x2b0] sm:$0xff]  ;;  %v1544_v50 = vld [vmem:[#allocation6 + $0x18] sm:$0xff] }
  0xd8   :  { %v3723_v19 = vstv %s1798_s0  ;;  %v3725_v33 = vand.u32 2147483647, %v3724_v9  ;;  %v1346_v31 = vadd.f32 %v1282_v7, %v1007_v22  ;;  %v269_v17 = vmul.f32 %v1541_v24, %v3680_v18  ;;  %v1546_v22 = vld [vmem:[#allocation6 + $0x38] sm:$0xff] }
  0xd9   :  { %v1234_v61 = vadd.f32 %v1233_v20, %v3722_v55  ;;  %v2873_v14 = vmul.f32 %v1491_v1, %v3723_v19  ;;  %v579_v62 = vmax.f32 %v577_v2, 1e-12  ;;  %v3726_v53 = vand.u32 2147483647, %v2664_v58  ;;  %v3730_v2 = vld [vmem:[#allocation18_spill] sm:$0xff]  ;;  %v1549_v19 = vld [vmem:[#allocation6 + $0x68] sm:$0xff] }
  0xda   :  { %v906_v16 = vadd.f32 %v905_v47, %v3725_v33  ;;  %v1009_v46 = vadd.f32 %v945_v4, %v670_v56  ;;  %v608_v6 = vmul.f32 %v1542_v41, %v2438_v60  ;;  %v3728_v44 = vand.u32 2147483647, %v3727_v40  ;;  %1410 = vst [vmem:[#allocation7 + $0x90] sm:$0xff] %v1346_v31  ;;  %v1547_v4 = vld [vmem:[#allocation6 + $0x48] sm:$0xff]  ;;  %v1548_v56 = vld [vmem:[#allocation6 + $0x58] sm:$0xff]  ;;  %v3733_v40 = vld [vmem:[#allocation49_spill] sm:$0xff] }
  0xdb   :  { %v1235_v39 = vadd.f32 %v1234_v61, %v3726_v53  ;;  %v2882_v20 = vmul.f32 %v1543_v32, %v2873_v14  ;;  %v2887_v7 = vmul.f32 %v1544_v50, %v2873_v14  ;;  %v2890_v15 = vmul.f32 %v1545_v0, %v2873_v14  ;;  %v1550_v33 = vld [vmem:[#allocation6 + $0x78] sm:$0xff]  ;;  %v1553_v50 = vld [vmem:[#allocation6 + $0xa8] sm:$0xff] }
  0xdc   :  { %v907_v34 = vadd.f32 %v906_v16, %v3728_v44  ;;  %1492 = vrcp.f32 %v579_v62  ;;  %v3729_v47 = vand.u32 2147483647, %v2666_v51  ;;  %v2895_v42 = vmul.f32 %v1546_v22, %v2873_v14  ;;  %v1551_v62 = vld [vmem:[#allocation6 + $0x88] sm:$0xff]  ;;  %v1554_v22 = vld [vmem:[#allocation6 + $0x4b0] sm:$0xff]  ;;  %v1618_v52 = vld [vmem:[#allocation6 + $0x418] sm:$0xff] }
  0xdd   :  { %v2898_v1 = vmul.f32 %v1547_v4, %v2873_v14  ;;  %v3731_v55 = vand.u32 2147483647, %v3730_v2  ;;  %v2903_v8 = vmul.f32 %v1548_v56, %v2873_v14  ;;  %v2906_v9 = vmul.f32 %v1549_v19, %v2873_v14  ;;  %v1556_v19 = vld [vmem:[#allocation6 + $0xb8] sm:$0xff]  ;;  %v1617_v58 = vld [vmem:[#allocation6 + $0x408] sm:$0xff] }
  0xde   :  { %v1236_v28 = vadd.f32 %v1235_v39, %v3729_v47  ;;  %v2909_v16 = vmul.f32 %v1550_v33, %v2873_v14  ;;  %v3732_v31 = vand.u32 2147483647, %v2668_v5  ;;  %v2914_v53 = vmul.f32 %v1551_v62, %v2873_v14  ;;  %v1552_v39 = vld [vmem:[#allocation6 + $0x98] sm:$0xff]  ;;  %v3736_v33 = vld [vmem:[#allocation19_spill] sm:$0xff] }
  0xdf   :  { %v908_v61 = vadd.f32 %v907_v34, %v3731_v55  ;;  %v2917_v41 = vmul.f32 %v1552_v39, %v2873_v14  ;;  %v1348_v32 = vadd.f32 %v1284_v29, %v1009_v46  ;;  %v3734_v44 = vand.u32 2147483647, %v3733_v40  ;;  %v1555_v55 = vld [vmem:[#allocation6 + $0x6b0] sm:$0xff]  ;;  %v1557_v46 = vld [vmem:[#allocation6 + $0xc0] sm:$0xff] }
  0xe0   :  { %v1237_v24 = vadd.f32 %v1236_v28, %v3732_v31  ;;  %v2922_v0 = vmul.f32 %v1553_v50, %v2873_v14  ;;  %v672_v47 = vadd.f32 %v608_v6, %v269_v17  ;;  %v947_v28 = vmul.f32 %v1554_v22, %v2650_v45  ;;  %v1558_v62 = vld [vmem:[#allocation6 + $0x2c0] sm:$0xff] }
  0xe1   :  { %v909_v34 = vadd.f32 %v908_v61, %v3734_v44  ;;  %v3735_v4 = vand.u32 2147483647, %v2674_v27  ;;  %1412 = vst [vmem:[#allocation7 + $0xa0] sm:$0xff] %v1348_v32  ;;  %v1286_v56 = vmul.f32 %v1555_v55, %v2795_v57  ;;  %v2929_v29 = vmul.f32 %v1556_v19, %v2873_v14  ;;  %v1559_v40 = vld [vmem:[#allocation6 + $0x4c0] sm:$0xff]  ;;  %v1562_v19 = vld [vmem:[#allocation6 + $0xd0] sm:$0xff] }
  0xe2   :  { %v271_v61 = vmul.f32 %v1557_v46, %v3680_v18  ;;  %v3737_v31 = vand.u32 2147483647, %v3736_v33  ;;  %v1011_v6 = vadd.f32 %v947_v28, %v672_v47  ;;  %v610_v39 = vmul.f32 %v1558_v62, %v2438_v60  ;;  %v1560_v50 = vld [vmem:[#allocation6 + $0x6c0] sm:$0xff]  ;;  %v1563_v33 = vld [vmem:[#allocation6 + $0x2d0] sm:$0xff] }
  0xe3   :  { %v1238_v2 = vadd.f32 %v1237_v24, %v3735_v4  ;;  %v949_v24 = vmul.f32 %v1559_v40, %v2650_v45  ;;  %v3738_v32 = vand.u32 2147483647, %v2676_v13  ;;  %v1288_v22 = vmul.f32 %v1560_v50, %v2795_v57  ;;  %v1561_v4 = vld [vmem:[#allocation6 + $0xc8] sm:$0xff]  ;;  %v1565_v50 = vld [vmem:[#allocation6 + $0x6d0] sm:$0xff]  ;;  %v1570_v5 = vld [vmem:[#allocation6 + $0x6e0] sm:$0xff] }
  0xe4   :  { %v910_v17 = vadd.f32 %v909_v34, %v3737_v31  ;;  %v2940_v55 = vmul.f32 %v1561_v4, %v2873_v14  ;;  %v273_v34 = vmul.f32 %v1562_v19, %v3680_v18  ;;  %v1350_v28 = vadd.f32 %v1286_v56, %v1011_v6  ;;  %v1566_v4 = vld [vmem:[#allocation6 + $0xd8] sm:$0xff]  ;;  %v1567_v6 = vld [vmem:[#allocation6 + $0xe0] sm:$0xff] }
  0xe5   :  { %v1239_v44 = vadd.f32 %v1238_v2, %v3738_v32  ;;  %v674_v46 = vadd.f32 %v610_v39, %v271_v61  ;;  %v612_v31 = vmul.f32 %v1563_v33, %v2438_v60  ;;  %v3739_v62 = vand.u32 2147483647, %v2684_v23  ;;  %v1564_v2 = vld [vmem:[#allocation6 + $0x4d0] sm:$0xff]  ;;  %v1569_v23 = vld [vmem:[#allocation6 + $0x4e0] sm:$0xff] }
  0xe6   :  { %v911_v47 = vrot.slane %v910_v17, 4  ;;  %v951_v32 = vmul.f32 %v1564_v2, %v2650_v45  ;;  %v1290_v13 = vmul.f32 %v1565_v50, %v2795_v57  ;;  %v2949_v27 = vmul.f32 %v1566_v4, %v2873_v14  ;;  %1414 = vst [vmem:[#allocation7 + $0xb0] sm:$0xff] %v1350_v28 }
  0xe7   :  { %v1240_v40 = vadd.f32 %v1239_v44, %v3739_v62  ;;  %v1013_v56 = vadd.f32 %v949_v24, %v674_v46  ;;  %v676_v61 = vadd.f32 %v612_v31, %v273_v34  ;;  %v275_v39 = vmul.f32 %v1567_v6, %v3680_v18  ;;  %v1568_v62 = vld [vmem:[#allocation6 + $0x2e0] sm:$0xff]  ;;  %v1571_v34 = vld [vmem:[#allocation6 + $0xe8] sm:$0xff]  ;;  %v1572_v6 = vld [vmem:[#allocation6 + $0xf0] sm:$0xff] }
  0xe8   :  { %v912_v19 = vadd.f32 %v911_v47, %v910_v17  ;;  %v3740_v33 = vand.u32 2147483647, %v2686_v26  ;;  %v614_v2 = vmul.f32 %v1568_v62, %v2438_v60  ;;  %v953_v50 = vmul.f32 %v1569_v23, %v2650_v45  ;;  %v1573_v23 = vld [vmem:[#allocation6 + $0x2f0] sm:$0xff] }
  0xe9   :  { %v2957_v4 = vmul.f32 %v1570_v5, %v2795_v57  ;;  %v1352_v47 = vadd.f32 %v1288_v22, %v1013_v56  ;;  %v1015_v24 = vadd.f32 %v951_v32, %v676_v61  ;;  %v2960_v28 = vmul.f32 %v1571_v34, %v2873_v14  ;;  %v1493_v5 = vpop.eup %1492  ;;  %v1574_v32 = vld [vmem:[#allocation6 + $0x4f0] sm:$0xff] }
  0xea   :  { %v1241_v44 = vadd.f32 %v1240_v40, %v3740_v33  ;;  %v913_v17 = vrot.slane %v912_v19, 2  ;;  %v3741_v46 = vand.u32 2147483647, %v2688_v59  ;;  %v678_v40 = vadd.f32 %v614_v2, %v275_v39  ;;  %v1575_v61 = vld [vmem:[#allocation6 + $0x6f0] sm:$0xff] }
  0xeb   :  { %v277_v33 = vmul.f32 %v1572_v6, %v3680_v18  ;;  %v616_v62 = vmul.f32 %v1573_v23, %v2438_v60  ;;  %1416 = vst [vmem:[#allocation7 + $0xc0] sm:$0xff] %v1352_v47  ;;  %v1354_v22 = vadd.f32 %v1290_v13, %v1015_v24  ;;  %v2967_v56 = vmul.f32 %v1574_v32, %v2650_v45  ;;  %v1578_v24 = vld [vmem:[#allocation6 + $0x300] sm:$0xff] }
  0xec   :  { %v1242_v31 = vadd.f32 %v1241_v44, %v3741_v46  ;;  %v914_v26 = vadd.f32 %v913_v17, %v912_v19  ;;  %v2970_v34 = vmul.f32 %v1575_v61, %v2795_v57  ;;  %v3742_v59 = vstv %s1858_s1  ;;  %v1576_v19 = vld [vmem:[#allocation6 + $0xf8] sm:$0xff]  ;;  %v1577_v17 = vld [vmem:[#allocation6 + $0x100] sm:$0xff]  ;;  %v1579_v61 = vld [vmem:[#allocation6 + $0x208] sm:$0xff] }
  0xed   :  { %v2974_v39 = vmul.f32 %v1493_v5, %v3742_v59  ;;  %v3743_v44 = vand.u32 2147483647, %v2696_v37  ;;  %v1017_v46 = vadd.f32 %v953_v50, %v678_v40  ;;  %v680_v6 = vadd.f32 %v616_v62, %v277_v33  ;;  %1418 = vst [vmem:[#allocation7 + $0xd0] sm:$0xff] %v1354_v22  ;;  %v1580_v50 = vld [vmem:[#allocation6 + $0x218] sm:$0xff]  ;;  %v1581_v33 = vld [vmem:[#allocation6 + $0x228] sm:$0xff] }
  0xee   :  { %v915_v23 = vrot.slane %v914_v26, 1  ;;  %v2979_v13 = vmul.f32 %v1576_v19, %v2873_v14  ;;  %v279_v47 = vmul.f32 %v1577_v17, %v3680_v18  ;;  %v618_v32 = vmul.f32 %v1578_v24, %v2438_v60  ;;  %v1582_v59 = vld [vmem:[#allocation6 + $0x238] sm:$0xff]  ;;  %v1583_v19 = vld [vmem:[#allocation6 + $0x248] sm:$0xff] }
  0xef   :  { %v1243_v2 = vadd.f32 %v1242_v31, %v3743_v44  ;;  %v587_v5 = vmul.f32 %v1579_v61, %v2974_v39  ;;  %v3744_v37 = vand.u32 2147483647, %v2698_v25  ;;  %v589_v40 = vmul.f32 %v1580_v50, %v2974_v39  ;;  %v1584_v24 = vld [vmem:[#allocation6 + $0x258] sm:$0xff] }
  0xf0   :  { %v591_v62 = vmul.f32 %v1581_v33, %v2974_v39  ;;  %v916_v22 = vadd.f32 %v915_v23, %v914_v26  ;;  %v593_v44 = vmul.f32 %v1582_v59, %v2974_v39  ;;  %v595_v17 = vmul.f32 %v1583_v19, %v2974_v39 }
  0xf1   :  { %v1244_v31 = vadd.f32 %v1243_v2, %v3744_v37  ;;  %v597_v51 = vmul.f32 %v1584_v24, %v2974_v39  ;;  %v2992_v61 = vadd.f32 %v587_v5, %v2882_v20  ;;  %v3745_v25 = vand.u32 2147483647, %v2706_v36  ;;  %v1585_v5 = vld [vmem:[#allocation6 + $0x268] sm:$0xff] }
  0xf2   :  { %v2997_v37 = vadd.f32 %v589_v40, %v2887_v7  ;;  %v3000_v26 = vadd.f32 %v591_v62, %v2890_v15  ;;  %v918_v23 = vmax.f32 %v916_v22, 1e-12  ;;  %v3003_v50 = vadd.f32 %v593_v44, %v2895_v42  ;;  %v1587_v40 = vld [vmem:[#allocation6 + $0x288] sm:$0xff]  ;;  %v1588_v42 = vld [vmem:[#allocation6 + $0x298] sm:$0xff]  ;;  %v3747_v44 = vld [vmem:[#allocation29_spill] sm:$0xff] }
  0xf3   :  { %v1245_v2 = vadd.f32 %v1244_v31, %v3745_v25  ;;  %v3006_v33 = vadd.f32 %v595_v17, %v2898_v1  ;;  %v3009_v59 = vadd.f32 %v597_v51, %v2903_v8  ;;  %v3746_v20 = vand.u32 2147483647, %v2708_v63  ;;  %v1586_v31 = vld [vmem:[#allocation6 + $0x278] sm:$0xff]  ;;  %v1589_v22 = vld [vmem:[#allocation6 + $0x2a8] sm:$0xff] }
  0xf4   :  { %v599_v7 = vmul.f32 %v1585_v5, %v2974_v39  ;;  %v601_v15 = vmul.f32 %v1586_v31, %v2974_v39  ;;  %v603_v62 = vmul.f32 %v1587_v40, %v2974_v39  ;;  %1494 = vrcp.f32 %v918_v23  ;;  %v1590_v8 = vld [vmem:[#allocation6 + $0x2b8] sm:$0xff]  ;;  %v1591_v31 = vld [vmem:[#allocation6 + $0x2c8] sm:$0xff] }
  0xf5   :  { %v1246_v36 = vadd.f32 %v1245_v2, %v3746_v20  ;;  %v605_v1 = vmul.f32 %v1588_v42, %v2974_v39  ;;  %v607_v51 = vmul.f32 %v1589_v22, %v2974_v39  ;;  %v609_v63 = vmul.f32 %v1590_v8, %v2974_v39  ;;  %v1594_v42 = vld [vmem:[#allocation6 + $0x2f8] sm:$0xff] }
  0xf6   :  { %v3748_v19 = vand.u32 2147483647, %v3747_v44  ;;  %v3022_v24 = vadd.f32 %v599_v7, %v2906_v9  ;;  %v3025_v25 = vadd.f32 %v601_v15, %v2909_v16  ;;  %v3028_v2 = vadd.f32 %v603_v62, %v2914_v53  ;;  %v3749_v9 = vld [vmem:[#allocation24_spill] sm:$0xff]  ;;  %v1592_v16 = vld [vmem:[#allocation6 + $0x2d8] sm:$0xff] }
  0xf7   :  { %v3031_v23 = vadd.f32 %v605_v1, %v2917_v41  ;;  %v3034_v20 = vadd.f32 %v607_v51, %v2922_v0  ;;  %v3037_v5 = vadd.f32 %v609_v63, %v2929_v29  ;;  %v3750_v7 = vand.u32 2147483647, %v3749_v9  ;;  %v1593_v62 = vld [vmem:[#allocation6 + $0x2e8] sm:$0xff]  ;;  %v3751_v51 = vld [vmem:[#allocation25_spill] sm:$0xff] }
  0xf8   :  { %v1247_v17 = vadd.f32 %v1246_v36, %v3748_v19  ;;  %v611_v36 = vmul.f32 %v1591_v31, %v2974_v39  ;;  %v613_v15 = vmul.f32 %v1592_v16, %v2974_v39  ;;  %v1356_v53 = vadd.f32 %v2957_v4, %v1017_v46  ;;  %v1595_v46 = vld [vmem:[#allocation6 + $0x500] sm:$0xff]  ;;  %v1599_v9 = vld [vmem:[#allocation6 + $0x110] sm:$0xff] }
  0xf9   :  { %v615_v41 = vmul.f32 %v1593_v62, %v2974_v39  ;;  %v1019_v29 = vadd.f32 %v2967_v56, %v680_v6  ;;  %v617_v1 = vmul.f32 %v1594_v42, %v2974_v39  ;;  %v682_v22 = vadd.f32 %v618_v32, %v279_v47  ;;  %v1596_v6 = vld [vmem:[#allocation6 + $0x700] sm:$0xff]  ;;  %v1597_v32 = vld [vmem:[#allocation6 + $0x108] sm:$0xff]  ;;  %v1603_v62 = vld [vmem:[#allocation6 + $0x118] sm:$0xff] }
  0xfa   :  { %v1248_v40 = vadd.f32 %v1247_v17, %v3750_v7  ;;  %v3046_v0 = vadd.f32 %v611_v36, %v2940_v55  ;;  %v3752_v8 = vand.u32 2147483647, %v3751_v51  ;;  %v3053_v44 = vadd.f32 %v613_v15, %v2949_v27  ;;  %1420 = vst [vmem:[#allocation7 + $0xe0] sm:$0xff] %v1356_v53  ;;  %v1598_v36 = vld [vmem:[#allocation6 + $0x308] sm:$0xff]  ;;  %v1602_v15 = vld [vmem:[#allocation6 + $0x710] sm:$0xff] }
  0xfb   :  { %v3056_v4 = vadd.f32 %v615_v41, %v2960_v28  ;;  %v957_v55 = vmul.f32 %v1595_v46, %v2650_v45  ;;  %v1358_v19 = vadd.f32 %v2970_v34, %v1019_v29  ;;  %v3061_v56 = vadd.f32 %v617_v1, %v2979_v13  ;;  %v1601_v13 = vld [vmem:[#allocation6 + $0x510] sm:$0xff]  ;;  %v1605_v46 = vld [vmem:[#allocation6 + $0x120] sm:$0xff] }
  0xfc   :  { %v1249_v63 = vadd.f32 %v1248_v40, %v3752_v8  ;;  %v1296_v47 = vmul.f32 %v1596_v6, %v2795_v57  ;;  %v280_v17 = vmul.f32 %v1597_v32, %v2873_v14  ;;  %v619_v28 = vmul.f32 %v1598_v36, %v2974_v39  ;;  %v1600_v40 = vld [vmem:[#allocation6 + $0x310] sm:$0xff]  ;;  %v1607_v32 = vld [vmem:[#allocation6 + $0x520] sm:$0xff] }
  0xfd   :  { %v1021_v31 = vadd.f32 %v957_v55, %v682_v22  ;;  %v281_v7 = vmul.f32 %v1599_v9, %v3680_v18  ;;  %1422 = vst [vmem:[#allocation7 + $0xf0] sm:$0xff] %v1358_v19  ;;  %v620_v34 = vmul.f32 %v1600_v40, %v2438_v60  ;;  %v959_v16 = vmul.f32 %v1601_v13, %v2650_v45  ;;  %v1604_v22 = vld [vmem:[#allocation6 + $0x318] sm:$0xff]  ;;  %v1606_v19 = vld [vmem:[#allocation6 + $0x320] sm:$0xff]  ;;  %v1611_v13 = vld [vmem:[#allocation6 + $0x130] sm:$0xff] }
  0xfe   :  { %v1250_v27 = vrot.slane %v1249_v63, 4  ;;  %v1298_v53 = vmul.f32 %v1602_v15, %v2795_v57  ;;  %v282_v41 = vmul.f32 %v1603_v62, %v2873_v14  ;;  %v3071_v1 = vadd.f32 %v619_v28, %v280_v17  ;;  %v1609_v17 = vld [vmem:[#allocation6 + $0x128] sm:$0xff] }
  0xff   :  { %v1360_v42 = vadd.f32 %v1296_v47, %v1021_v31  ;;  %v621_v51 = vmul.f32 %v1604_v22, %v2974_v39  ;;  %v684_v8 = vadd.f32 %v620_v34, %v281_v7  ;;  %v283_v55 = vmul.f32 %v1605_v46, %v3680_v18  ;;  %v1610_v7 = vld [vmem:[#allocation6 + $0x328] sm:$0xff] }
 0x100   :  { %v1251_v29 = vadd.f32 %v1250_v27, %v1249_v63  ;;  %v622_v6 = vmul.f32 %v1606_v19, %v2438_v60  ;;  %v961_v36 = vmul.f32 %v1607_v32, %v2650_v45  ;;  %v1608_v63 = vld [vmem:[#allocation6 + $0x720] sm:$0xff]  ;;  %v284_v27 = vmul.f32 %v1609_v17, %v2873_v14  ;;  %v1614_v19 = vld [vmem:[#allocation6 + $0x730] sm:$0xff] }
 0x101   :  { %1424 = vst [vmem:[#allocation7 + $0x100] sm:$0xff] %v1360_v42  ;;  %v3077_v40 = vadd.f32 %v621_v51, %v282_v41  ;;  %v3080_v47 = vmul.f32 %v1608_v63, %v2795_v57  ;;  %v1023_v31 = vadd.f32 %v959_v16, %v684_v8  ;;  %v623_v34 = vmul.f32 %v1610_v7, %v2974_v39  ;;  %v1495_v62 = vpop.eup %1494  ;;  %v1612_v41 = vld [vmem:[#allocation6 + $0x330] sm:$0xff] }
 0x102   :  { %v1252_v9 = vrot.slane %v1251_v29, 2  ;;  %v686_v28 = vadd.f32 %v622_v6, %v283_v55  ;;  %v285_v15 = vmul.f32 %v1611_v13, %v3680_v18  ;;  %v624_v22 = vmul.f32 %v1612_v41, %v2438_v60  ;;  %v1613_v51 = vld [vmem:[#allocation6 + $0x530] sm:$0xff]  ;;  %v1615_v13 = vld [vmem:[#allocation6 + $0x138] sm:$0xff] }
 0x103   :  { %v963_v46 = vmul.f32 %v1613_v51, %v2650_v45  ;;  %v1302_v32 = vmul.f32 %v1614_v19, %v2795_v57  ;;  %v3753_v63 = vstv %s1942_s19  ;;  %v1362_v8 = vadd.f32 %v1298_v53, %v1023_v31  ;;  %v3754_v53 = vld [vmem:[#allocation13_spill] sm:$0xff] }
 0x104   :  { %v1253_v42 = vadd.f32 %v1252_v9, %v1251_v29  ;;  %v3090_v16 = vmul.f32 %v1495_v62, %v3753_v63  ;;  %v1025_v55 = vadd.f32 %v961_v36, %v686_v28  ;;  %v687_v6 = vadd.f32 %v623_v34, %v284_v27  ;;  %v1616_v9 = vld [vmem:[#allocation6 + $0x338] sm:$0xff]  ;;  %v3755_v31 = vld [vmem:[#allocation37_spill] sm:$0xff]  ;;  %v3756_v34 = vld [vmem:[#allocation39_spill] sm:$0xff] }
 0x105   :  { %v688_v7 = vadd.f32 %v624_v22, %v285_v15  ;;  %v286_v29 = vmul.f32 %v1615_v13, %v2873_v14  ;;  %v625_v41 = vmul.f32 %v1616_v9, %v2974_v39  ;;  %1426 = vst [vmem:[#allocation7 + $0x110] sm:$0xff] %v1362_v8  ;;  %v3757_v22 = vld [vmem:[#allocation40_spill] sm:$0xff] }
 0x106   :  { %v1254_v17 = vrot.slane %v1253_v42, 1  ;;  %v926_v51 = vmul.f32 %v1617_v58, %v3090_v16  ;;  %v928_v19 = vmul.f32 %v1618_v52, %v3090_v16  ;;  %v930_v62 = vmul.f32 %v1619_v35, %v3090_v16 }
 0x107   :  { %v932_v36 = vmul.f32 %v3090_v16, %v3754_v53  ;;  %v934_v28 = vmul.f32 %v3090_v16, %v3755_v31  ;;  %v936_v15 = vmul.f32 %v3090_v16, %v3756_v34  ;;  %v938_v58 = vmul.f32 %v3090_v16, %v3757_v22 }
 0x108   :  { %v1255_v27 = vadd.f32 %v1254_v17, %v1253_v42  ;;  %v3106_v63 = vadd.f32 %v926_v51, %v2992_v61  ;;  %v3109_v52 = vadd.f32 %v928_v19, %v2997_v37  ;;  %v3112_v35 = vadd.f32 %v930_v62, %v3000_v26  ;;  %v3758_v61 = vld [vmem:[#allocation41_spill] sm:$0xff]  ;;  %v3759_v51 = vld [vmem:[#allocation42_spill] sm:$0xff]  ;;  %v3760_v19 = vld [vmem:[#allocation43_spill] sm:$0xff] }
 0x109   :  { %v3115_v42 = vadd.f32 %v932_v36, %v3003_v50  ;;  %v3118_v17 = vadd.f32 %v934_v28, %v3006_v33  ;;  %v3121_v13 = vadd.f32 %v936_v15, %v3009_v59  ;;  %v3124_v9 = vadd.f32 %v938_v58, %v3022_v24  ;;  %v3761_v62 = vld [vmem:[#allocation44_spill] sm:$0xff]  ;;  %v3762_v33 = vld [vmem:[#allocation45_spill] sm:$0xff]  ;;  %v3763_v36 = vld [vmem:[#allocation46_spill] sm:$0xff] }
 0x10a   :  { %v1257_v8 = vmax.f32 %v1255_v27, 1e-12  ;;  %v940_v37 = vmul.f32 %v3090_v16, %v3758_v61  ;;  %v942_v26 = vmul.f32 %v3090_v16, %v3759_v51  ;;  %v944_v50 = vmul.f32 %v3090_v16, %v3760_v19  ;;  %v3764_v27 = vld [vmem:[#allocation47_spill] sm:$0xff] }
 0x10b   :  { %v946_v53 = vmul.f32 %v3090_v16, %v3761_v62  ;;  %v948_v59 = vmul.f32 %v3090_v16, %v3762_v33  ;;  %v950_v24 = vmul.f32 %v3090_v16, %v3763_v36  ;;  %v952_v31 = vmul.f32 %v3090_v16, %v3764_v27 }
 0x10c   :  { %1496 = vrcp.f32 %v1257_v8  ;;  %v3141_v28 = vadd.f32 %v940_v37, %v3025_v25  ;;  %v3144_v34 = vadd.f32 %v942_v26, %v3028_v2  ;;  %v3147_v15 = vadd.f32 %v944_v50, %v3031_v23  ;;  %v3765_v2 = vld [vmem:[#allocation15_spill] sm:$0xff]  ;;  %v3766_v23 = vld [vmem:[#allocation48_spill] sm:$0xff] }
 0x10d   :  { %v3150_v22 = vadd.f32 %v946_v53, %v3034_v20  ;;  %v3153_v58 = vadd.f32 %v948_v59, %v3037_v5  ;;  %v3156_v8 = vadd.f32 %v950_v24, %v3046_v0  ;;  %v3159_v61 = vadd.f32 %v952_v31, %v3053_v44  ;;  %v1624_v53 = vld [vmem:[#allocation6 + $0x148] sm:$0xff]  ;;  %v1627_v24 = vld [vmem:[#allocation6 + $0x150] sm:$0xff] }
 0x10e   :  { %v954_v25 = vmul.f32 %v3090_v16, %v2483_v11  ;;  %v956_v37 = vmul.f32 %v3090_v16, %v3765_v2  ;;  %v958_v51 = vmul.f32 %v3090_v16, %v3766_v23  ;;  %v960_v20 = vmul.f32 %v3090_v16, %v2492_v38  ;;  %v1626_v59 = vld [vmem:[#allocation6 + $0x548] sm:$0xff]  ;;  %v1628_v31 = vld [vmem:[#allocation6 + $0x350] sm:$0xff] }
 0x10f   :  { %v1364_v5 = vadd.f32 %v3080_v47, %v1025_v55  ;;  %v962_v44 = vmul.f32 %v3090_v16, %v2494_v48  ;;  %v1027_v26 = vadd.f32 %v963_v46, %v688_v7  ;;  %v689_v19 = vadd.f32 %v625_v41, %v286_v29  ;;  %v1620_v55 = vld [vmem:[#allocation6 + $0x140] sm:$0xff]  ;;  %v1629_v2 = vld [vmem:[#allocation6 + $0x550] sm:$0xff] }
 0x110   :  { %v3171_v0 = vadd.f32 %v954_v25, %v3056_v4  ;;  %v3176_v11 = vadd.f32 %v956_v37, %v3061_v56  ;;  %v3179_v50 = vadd.f32 %v958_v51, %v3071_v1  ;;  %v3182_v62 = vadd.f32 %v960_v20, %v3077_v40  ;;  %v1621_v46 = vld [vmem:[#allocation6 + $0x340] sm:$0xff]  ;;  %v1630_v23 = vld [vmem:[#allocation6 + $0x750] sm:$0xff]  ;;  %v1631_v20 = vld [vmem:[#allocation6 + $0x158] sm:$0xff] }
 0x111   :  { %1428 = vst [vmem:[#allocation7 + $0x120] sm:$0xff] %v1364_v5  ;;  %v964_v38 = vmul.f32 %v3090_v16, %v2502_v21  ;;  %v3186_v4 = vadd.f32 %v962_v44, %v687_v6  ;;  %v1366_v47 = vadd.f32 %v1302_v32, %v1027_v26  ;;  %v287_v48 = vmul.f32 %v1620_v55, %v3680_v18  ;;  %v1622_v1 = vld [vmem:[#allocation6 + $0x540] sm:$0xff]  ;;  %v1625_v32 = vld [vmem:[#allocation6 + $0x348] sm:$0xff] }
 0x112   :  { %v626_v56 = vmul.f32 %v1621_v46, %v2438_v60  ;;  %v965_v29 = vmul.f32 %v1622_v1, %v2650_v45  ;;  %v1623_v40 = vld [vmem:[#allocation6 + $0x740] sm:$0xff]  ;;  %v288_v21 = vmul.f32 %v1624_v53, %v2873_v14  ;;  %v627_v33 = vmul.f32 %v1625_v32, %v2974_v39 }
 0x113   :  { %v3190_v7 = vadd.f32 %v964_v38, %v689_v19  ;;  %v1304_v41 = vmul.f32 %v1623_v40, %v2795_v57  ;;  %1430 = vst [vmem:[#allocation7 + $0x130] sm:$0xff] %v1366_v47  ;;  %v966_v36 = vmul.f32 %v1626_v59, %v3090_v16  ;;  %v289_v27 = vmul.f32 %v1627_v24, %v3680_v18  ;;  %v1632_v19 = vld [vmem:[#allocation6 + $0x358] sm:$0xff]  ;;  %v1634_v46 = vld [vmem:[#allocation6 + $0x160] sm:$0xff] }
 0x114   :  { %v690_v6 = vadd.f32 %v626_v56, %v287_v48  ;;  %v628_v25 = vmul.f32 %v1628_v31, %v2438_v60  ;;  %v967_v37 = vmul.f32 %v1629_v2, %v2650_v45  ;;  %v1306_v51 = vmul.f32 %v1630_v23, %v2795_v57  ;;  %v1633_v47 = vld [vmem:[#allocation6 + $0x558] sm:$0xff]  ;;  %v1635_v1 = vld [vmem:[#allocation6 + $0x360] sm:$0xff]  ;;  %v1639_v23 = vld [vmem:[#allocation6 + $0x368] sm:$0xff] }
 0x115   :  { %v290_v5 = vmul.f32 %v1631_v20, %v2873_v14  ;;  %v691_v26 = vadd.f32 %v627_v33, %v288_v21  ;;  %v629_v38 = vmul.f32 %v1632_v19, %v2974_v39  ;;  %v968_v55 = vmul.f32 %v1633_v47, %v3090_v16  ;;  %v1636_v53 = vld [vmem:[#allocation6 + $0x560] sm:$0xff] }
 0x116   :  { %v1029_v44 = vadd.f32 %v965_v29, %v690_v6  ;;  %v692_v48 = vadd.f32 %v628_v25, %v289_v27  ;;  %v291_v56 = vmul.f32 %v1634_v46, %v3680_v18  ;;  %v630_v40 = vmul.f32 %v1635_v1, %v2438_v60  ;;  %v1637_v6 = vld [vmem:[#allocation6 + $0x760] sm:$0xff]  ;;  %v1638_v25 = vld [vmem:[#allocation6 + $0x168] sm:$0xff]  ;;  %v1642_v46 = vld [vmem:[#allocation6 + $0x370] sm:$0xff] }
 0x117   :  { %v969_v32 = vmul.f32 %v1636_v53, %v2650_v45  ;;  %v3207_v29 = vadd.f32 %v966_v36, %v691_v26  ;;  %v693_v21 = vadd.f32 %v629_v38, %v290_v5  ;;  %v3210_v33 = vmul.f32 %v1637_v6, %v2795_v57  ;;  %v1640_v36 = vld [vmem:[#allocation6 + $0x568] sm:$0xff]  ;;  %v3768_v1 = vld [vmem:[#allocation50_spill] sm:$0xff] }
 0x118   :  { %v1368_v59 = vadd.f32 %v1304_v41, %v1029_v44  ;;  %v1031_v27 = vadd.f32 %v967_v37, %v692_v48  ;;  %v694_v31 = vadd.f32 %v630_v40, %v291_v56  ;;  %v292_v2 = vmul.f32 %v1638_v25, %v2873_v14  ;;  %v1641_v44 = vld [vmem:[#allocation6 + $0x170] sm:$0xff]  ;;  %v3771_v6 = vld [vmem:[#allocation52_spill] sm:$0xff] }
 0x119   :  { %v1497_v24 = vpop.eup %1496  ;;  %v631_v20 = vmul.f32 %v1639_v23, %v2974_v39  ;;  %v3767_v19 = vstv %s2051_s20  ;;  %v3218_v41 = vadd.f32 %v968_v55, %v693_v21  ;;  %v3221_v5 = vmul.f32 %v1640_v36, %v3090_v16  ;;  %v3769_v55 = vld [vmem:[#allocation20_spill] sm:$0xff]  ;;  %v3772_v25 = vld [vmem:[#allocation53_spill] sm:$0xff] }
 0x11a   :  { %v3216_v47 = vmul.f32 %v1497_v24, %v3767_v19  ;;  %1432 = vst [vmem:[#allocation7 + $0x140] sm:$0xff] %v1368_v59  ;;  %v3224_v37 = vmul.f32 %v1641_v44, %v3680_v18  ;;  %v1370_v26 = vadd.f32 %v1306_v51, %v1031_v27  ;;  %v1033_v38 = vadd.f32 %v969_v32, %v694_v31  ;;  %v3770_v59 = vld [vmem:[#allocation51_spill] sm:$0xff]  ;;  %v3773_v32 = vld [vmem:[#allocation54_spill] sm:$0xff]  ;;  %v3775_v23 = vld [vmem:[#allocation56_spill] sm:$0xff] }
 0x11b   :  { %v695_v48 = vadd.f32 %v631_v20, %v292_v2  ;;  %v3227_v56 = vmul.f32 %v1642_v46, %v2438_v60  ;;  %v3774_v31 = vld [vmem:[#allocation55_spill] sm:$0xff] }
 0x11c   :  { %v1265_v40 = vmul.f32 %v3216_v47, %v3768_v1  ;;  %v1267_v53 = vmul.f32 %v3216_v47, %v3769_v55  ;;  %v1269_v21 = vmul.f32 %v3216_v47, %v3770_v59  ;;  %v1271_v24 = vmul.f32 %v3216_v47, %v3771_v6  ;;  %1434 = vst [vmem:[#allocation7 + $0x150] sm:$0xff] %v1370_v26 }
 0x11d   :  { %v1273_v51 = vmul.f32 %v3216_v47, %v3772_v25  ;;  %v1275_v27 = vmul.f32 %v3216_v47, %v3773_v32  ;;  %v1277_v2 = vmul.f32 %v3216_v47, %v3774_v31  ;;  %v1279_v20 = vmul.f32 %v3216_v47, %v3775_v23 }
 0x11e   :  { %v1329_v19 = vadd.f32 %v1265_v40, %v3106_v63  ;;  %v1331_v36 = vadd.f32 %v1267_v53, %v3109_v52  ;;  %v1333_v44 = vadd.f32 %v1269_v21, %v3112_v35  ;;  %v1335_v46 = vadd.f32 %v1271_v24, %v3115_v42  ;;  %v3779_v21 = vld [vmem:[#allocation60_spill] sm:$0xff]  ;;  %v3782_v24 = vld [vmem:[#allocation63_spill] sm:$0xff] }
 0x11f   :  { %v1337_v1 = vadd.f32 %v1273_v51, %v3118_v17  ;;  %v1339_v55 = vadd.f32 %v1275_v27, %v3121_v13  ;;  %v1341_v59 = vadd.f32 %v1277_v2, %v3124_v9  ;;  %v1343_v6 = vadd.f32 %v1279_v20, %v3141_v28 }
 0x120   :  { %1393 = vst [vmem:[#allocation7 + $0x8] sm:$0xff] %v1329_v19  ;;  %1395 = vst [vmem:[#allocation7 + $0x18] sm:$0xff] %v1331_v36  ;;  %v1281_v63 = vmul.f32 %v3216_v47, %v2613_v10  ;;  %v1283_v52 = vmul.f32 %v3216_v47, %v2625_v54  ;;  %v1285_v35 = vmul.f32 %v3216_v47, %v2627_v30  ;;  %v3776_v54 = vld [vmem:[#allocation58_spill] sm:$0xff]  ;;  %v3783_v36 = vld [vmem:[#allocation64_spill] sm:$0xff] }
 0x121   :  { %1397 = vst [vmem:[#allocation7 + $0x28] sm:$0xff] %v1333_v44  ;;  %1399 = vst [vmem:[#allocation7 + $0x38] sm:$0xff] %v1335_v46  ;;  %v1287_v42 = vmul.f32 %v3216_v47, %v2629_v3  ;;  %v1289_v17 = vmul.f32 %v3216_v47, %v2641_v12  ;;  %v1291_v13 = vmul.f32 %v3216_v47, %v2643_v43  ;;  %v3784_v46 = vld [vmem:[#allocation65_spill] sm:$0xff] }
 0x122   :  { %1401 = vst [vmem:[#allocation7 + $0x48] sm:$0xff] %v1337_v1  ;;  %1403 = vst [vmem:[#allocation7 + $0x58] sm:$0xff] %v1339_v55  ;;  %v1293_v10 = vmul.f32 %v3216_v47, %v3714_v49  ;;  %v1295_v9 = vmul.f32 %v3216_v47, %v3776_v54  ;;  %v1345_v30 = vadd.f32 %v1281_v63, %v3144_v34  ;;  %v3777_v49 = vld [vmem:[#allocation59_spill] sm:$0xff]  ;;  %v1652_v54 = vld [vmem:[#allocation6 + $0x188] sm:$0xff] }
 0x123   :  { %1405 = vst [vmem:[#allocation7 + $0x68] sm:$0xff] %v1341_v59  ;;  %1407 = vst [vmem:[#allocation7 + $0x78] sm:$0xff] %v1343_v6  ;;  %v1347_v3 = vadd.f32 %v1283_v52, %v3147_v15  ;;  %v1349_v28 = vadd.f32 %v1285_v35, %v3150_v22  ;;  %v1351_v26 = vadd.f32 %v1287_v42, %v3153_v58  ;;  %v3778_v15 = vld [vmem:[#allocation23_spill] sm:$0xff] }
 0x124   :  { %v1353_v40 = vadd.f32 %v1289_v17, %v3156_v8  ;;  %v1355_v12 = vadd.f32 %v1291_v13, %v3159_v61  ;;  %v1357_v43 = vadd.f32 %v1293_v10, %v3171_v0  ;;  %v1359_v53 = vadd.f32 %v1295_v9, %v3176_v11  ;;  %1409 = vst [vmem:[#allocation7 + $0x88] sm:$0xff] %v1345_v30  ;;  %v3780_v8 = vld [vmem:[#allocation61_spill] sm:$0xff]  ;;  %v3781_v0 = vld [vmem:[#allocation62_spill] sm:$0xff]  ;;  %v1648_v55 = vld [vmem:[#allocation6 + $0x180] sm:$0xff] }
 0x125   :  { %1411 = vst [vmem:[#allocation7 + $0x98] sm:$0xff] %v1347_v3  ;;  %1413 = vst [vmem:[#allocation7 + $0xa8] sm:$0xff] %v1349_v28  ;;  %v1297_v34 = vmul.f32 %v3216_v47, %v3777_v49  ;;  %v1299_v22 = vmul.f32 %v3216_v47, %v3778_v15  ;;  %v1301_v58 = vmul.f32 %v3216_v47, %v3779_v21  ;;  %v1649_v52 = vld [vmem:[#allocation6 + $0x380] sm:$0xff]  ;;  %v1653_v30 = vld [vmem:[#allocation6 + $0x388] sm:$0xff] }
 0x126   :  { %1415 = vst [vmem:[#allocation7 + $0xb8] sm:$0xff] %v1351_v26  ;;  %v1303_v61 = vmul.f32 %v3216_v47, %v3780_v8  ;;  %1417 = vst [vmem:[#allocation7 + $0xc8] sm:$0xff] %v1353_v40  ;;  %v1305_v11 = vmul.f32 %v3216_v47, %v3781_v0  ;;  %v1307_v25 = vmul.f32 %v3216_v47, %v3782_v24  ;;  %v1650_v42 = vld [vmem:[#allocation6 + $0x580] sm:$0xff]  ;;  %v1654_v28 = vld [vmem:[#allocation6 + $0x588] sm:$0xff] }
 0x127   :  { %1419 = vst [vmem:[#allocation7 + $0xd8] sm:$0xff] %v1355_v12  ;;  %1421 = vst [vmem:[#allocation7 + $0xe8] sm:$0xff] %v1357_v43  ;;  %v1372_v51 = vadd.f32 %v3210_v33, %v1033_v38  ;;  %v1034_v32 = vadd.f32 %v3221_v5, %v695_v48  ;;  %v1361_v27 = vadd.f32 %v1297_v34, %v3179_v50  ;;  %v1643_v50 = vld [vmem:[#allocation6 + $0x570] sm:$0xff]  ;;  %v1646_v5 = vld [vmem:[#allocation6 + $0x378] sm:$0xff] }
 0x128   :  { %1423 = vst [vmem:[#allocation7 + $0xf8] sm:$0xff] %v1359_v53  ;;  %v1363_v31 = vadd.f32 %v1299_v22, %v3182_v62  ;;  %v1365_v2 = vadd.f32 %v1301_v58, %v3186_v4  ;;  %v1367_v23 = vadd.f32 %v1303_v61, %v3190_v7  ;;  %v1369_v20 = vadd.f32 %v1305_v11, %v3207_v29  ;;  %v1644_v4 = vld [vmem:[#allocation6 + $0x770] sm:$0xff]  ;;  %v1645_v29 = vld [vmem:[#allocation6 + $0x178] sm:$0xff]  ;;  %v1651_v13 = vld [vmem:[#allocation6 + $0x780] sm:$0xff] }
 0x129   :  { %v1371_v19 = vadd.f32 %v1307_v25, %v3218_v41  ;;  %1436 = vst [vmem:[#allocation7 + $0x160] sm:$0xff] %v1372_v51  ;;  %v1309_v44 = vmul.f32 %v3216_v47, %v3783_v36  ;;  %v696_v33 = vadd.f32 %v3227_v56, %v3224_v37  ;;  %1425 = vst [vmem:[#allocation7 + $0x108] sm:$0xff] %v1361_v27  ;;  %v1647_v37 = vld [vmem:[#allocation6 + $0x578] sm:$0xff]  ;;  %v1655_v53 = vld [vmem:[#allocation6 + $0x788] sm:$0xff] }
 0x12a   :  { %1427 = vst [vmem:[#allocation7 + $0x118] sm:$0xff] %v1363_v31  ;;  %1429 = vst [vmem:[#allocation7 + $0x128] sm:$0xff] %v1365_v2  ;;  %v971_v62 = vmul.f32 %v1643_v50, %v2650_v45  ;;  %v1310_v7 = vmul.f32 %v1644_v4, %v2795_v57  ;;  %v294_v41 = vmul.f32 %v1645_v29, %v2873_v14  ;;  %v1656_v15 = vld [vmem:[#allocation6 + $0x190] sm:$0xff]  ;;  %v1660_v51 = vld [vmem:[#allocation6 + $0x198] sm:$0xff] }
 0x12b   :  { %1431 = vst [vmem:[#allocation7 + $0x138] sm:$0xff] %v1367_v23  ;;  %v633_v38 = vmul.f32 %v1646_v5, %v2974_v39  ;;  %1433 = vst [vmem:[#allocation7 + $0x148] sm:$0xff] %v1369_v20  ;;  %v1373_v48 = vadd.f32 %v1309_v44, %v1034_v32  ;;  %v972_v56 = vmul.f32 %v1647_v37, %v3090_v16  ;;  %v1657_v21 = vld [vmem:[#allocation6 + $0x390] sm:$0xff]  ;;  %v1661_v2 = vld [vmem:[#allocation6 + $0x398] sm:$0xff] }
 0x12c   :  { %1435 = vst [vmem:[#allocation7 + $0x158] sm:$0xff] %v1371_v19  ;;  %v1311_v1 = vmul.f32 %v3216_v47, %v3784_v46  ;;  %v295_v59 = vmul.f32 %v1648_v55, %v3680_v18  ;;  %v1035_v6 = vadd.f32 %v971_v62, %v696_v33  ;;  %v634_v35 = vmul.f32 %v1649_v52, %v2438_v60  ;;  %v1658_v8 = vld [vmem:[#allocation6 + $0x590] sm:$0xff]  ;;  %v1662_v20 = vld [vmem:[#allocation6 + $0x598] sm:$0xff]  ;;  %v1664_v50 = vld [vmem:[#allocation6 + $0x1a0] sm:$0xff] }
 0x12d   :  { %v697_v63 = vadd.f32 %v633_v38, %v294_v41  ;;  %v973_v17 = vmul.f32 %v1650_v42, %v2650_v45  ;;  %1437 = vst [vmem:[#allocation7 + $0x168] sm:$0xff] %v1373_v48  ;;  %v1312_v10 = vmul.f32 %v1651_v13, %v2795_v57  ;;  %v296_v9 = vmul.f32 %v1652_v54, %v2873_v14  ;;  %v1659_v24 = vld [vmem:[#allocation6 + $0x790] sm:$0xff]  ;;  %v1663_v44 = vld [vmem:[#allocation6 + $0x798] sm:$0xff]  ;;  %v1665_v4 = vld [vmem:[#allocation6 + $0x3a0] sm:$0xff] }
 0x12e   :  { %v635_v3 = vmul.f32 %v1653_v30, %v2974_v39  ;;  %v974_v26 = vmul.f32 %v1654_v28, %v3090_v16  ;;  %v1374_v40 = vadd.f32 %v1310_v7, %v1035_v6  ;;  %v698_v43 = vadd.f32 %v634_v35, %v295_v59  ;;  %v1666_v38 = vld [vmem:[#allocation6 + $0x5a0] sm:$0xff]  ;;  %v1669_v59 = vld [vmem:[#allocation6 + $0x3a8] sm:$0xff] }
 0x12f   :  { %v1036_v12 = vadd.f32 %v972_v56, %v697_v63  ;;  %v1313_v49 = vmul.f32 %v1655_v53, %v3216_v47  ;;  %v297_v22 = vmul.f32 %v1656_v15, %v3680_v18  ;;  %v636_v58 = vmul.f32 %v1657_v21, %v2438_v60  ;;  %v1667_v56 = vld [vmem:[#allocation6 + $0x7a0] sm:$0xff]  ;;  %v1670_v35 = vld [vmem:[#allocation6 + $0x5a8] sm:$0xff] }
 0x130   :  { %v699_v34 = vadd.f32 %v635_v3, %v296_v9  ;;  %v975_v61 = vmul.f32 %v1658_v8, %v2650_v45  ;;  %1438 = vst [vmem:[#allocation7 + $0x170] sm:$0xff] %v1374_v40  ;;  %v1037_v11 = vadd.f32 %v973_v17, %v698_v43  ;;  %v1314_v25 = vmul.f32 %v1659_v24, %v2795_v57  ;;  %v1671_v17 = vld [vmem:[#allocation6 + $0x7a8] sm:$0xff]  ;;  %v1672_v9 = vld [vmem:[#allocation6 + $0x1b0] sm:$0xff] }
 0x131   :  { %v1375_v0 = vadd.f32 %v1311_v1, %v1036_v12  ;;  %v298_v32 = vmul.f32 %v1660_v51, %v2873_v14  ;;  %v700_v31 = vadd.f32 %v636_v58, %v297_v22  ;;  %v637_v23 = vmul.f32 %v1661_v2, %v2974_v39  ;;  %v1668_v1 = vld [vmem:[#allocation6 + $0x1a8] sm:$0xff]  ;;  %v1673_v3 = vld [vmem:[#allocation6 + $0x3b0] sm:$0xff]  ;;  %v1677_v58 = vld [vmem:[#allocation6 + $0x3b8] sm:$0xff] }
 0x132   :  { %v1038_v27 = vadd.f32 %v974_v26, %v699_v34  ;;  %v976_v19 = vmul.f32 %v1662_v20, %v3090_v16  ;;  %v1376_v36 = vadd.f32 %v1312_v10, %v1037_v11  ;;  %v1315_v33 = vmul.f32 %v1663_v44, %v3216_v47  ;;  %v1674_v40 = vld [vmem:[#allocation6 + $0x5b0] sm:$0xff]  ;;  %v1679_v11 = vld [vmem:[#allocation6 + $0x7b8] sm:$0xff]  ;;  %v1682_v20 = vld [vmem:[#allocation6 + $0x5c0] sm:$0xff] }
 0x133   :  { %1439 = vst [vmem:[#allocation7 + $0x178] sm:$0xff] %v1375_v0  ;;  %v299_v62 = vmul.f32 %v1664_v50, %v3680_v18  ;;  %v638_v7 = vmul.f32 %v1665_v4, %v2438_v60  ;;  %v1039_v41 = vadd.f32 %v975_v61, %v700_v31  ;;  %v701_v5 = vadd.f32 %v637_v23, %v298_v32  ;;  %v1675_v43 = vld [vmem:[#allocation6 + $0x7b0] sm:$0xff]  ;;  %v1678_v61 = vld [vmem:[#allocation6 + $0x5b8] sm:$0xff]  ;;  %v1681_v32 = vld [vmem:[#allocation6 + $0x3c0] sm:$0xff] }
 0x134   :  { %v1377_v29 = vadd.f32 %v1313_v49, %v1038_v27  ;;  %v977_v48 = vmul.f32 %v1666_v38, %v2650_v45  ;;  %1440 = vst [vmem:[#allocation7 + $0x180] sm:$0xff] %v1376_v36  ;;  %v1316_v46 = vmul.f32 %v1667_v56, %v2795_v57  ;;  %v300_v55 = vmul.f32 %v1668_v1, %v2873_v14  ;;  %v1676_v49 = vld [vmem:[#allocation6 + $0x1b8] sm:$0xff]  ;;  %v1683_v44 = vld [vmem:[#allocation6 + $0x7c0] sm:$0xff]  ;;  %v1684_v50 = vld [vmem:[#allocation6 + $0x1c8] sm:$0xff] }
 0x135   :  { %v702_v37 = vadd.f32 %v638_v7, %v299_v62  ;;  %v639_v6 = vmul.f32 %v1669_v59, %v2974_v39  ;;  %v1378_v63 = vadd.f32 %v1314_v25, %v1039_v41  ;;  %v1040_v52 = vadd.f32 %v976_v19, %v701_v5  ;;  %v1680_v25 = vld [vmem:[#allocation6 + $0x1c0] sm:$0xff]  ;;  %v1685_v4 = vld [vmem:[#allocation6 + $0x3c8] sm:$0xff]  ;;  %v1688_v1 = vld [vmem:[#allocation6 + $0x1d0] sm:$0xff] }
 0x136   :  { %1441 = vst [vmem:[#allocation7 + $0x188] sm:$0xff] %v1377_v29  ;;  %v978_v42 = vmul.f32 %v1670_v35, %v3090_v16  ;;  %v1317_v13 = vmul.f32 %v1671_v17, %v3216_v47  ;;  %v301_v30 = vmul.f32 %v1672_v9, %v3680_v18  ;;  %v640_v28 = vmul.f32 %v1673_v3, %v2438_v60  ;;  %v1686_v5 = vld [vmem:[#allocation6 + $0x5c8] sm:$0xff]  ;;  %v1689_v59 = vld [vmem:[#allocation6 + $0x3d0] sm:$0xff]  ;;  %v1693_v3 = vld [vmem:[#allocation6 + $0x3d8] sm:$0xff] }
 0x137   :  { %v1041_v10 = vadd.f32 %v977_v48, %v702_v37  ;;  %v703_v54 = vadd.f32 %v639_v6, %v300_v55  ;;  %1442 = vst [vmem:[#allocation7 + $0x190] sm:$0xff] %v1378_v63  ;;  %v1379_v26 = vadd.f32 %v1315_v33, %v1040_v52  ;;  %v979_v12 = vmul.f32 %v1674_v40, %v2650_v45  ;;  %v1687_v48 = vld [vmem:[#allocation6 + $0x7c8] sm:$0xff]  ;;  %v1690_v52 = vld [vmem:[#allocation6 + $0x5d0] sm:$0xff] }
 0x138   :  { %v1318_v53 = vmul.f32 %v1675_v43, %v2795_v57  ;;  %v302_v34 = vmul.f32 %v1676_v49, %v2873_v14  ;;  %v704_v21 = vadd.f32 %v640_v28, %v301_v30  ;;  %v641_v8 = vmul.f32 %v1677_v58, %v2974_v39 }
 0x139   :  { %v1380_v15 = vadd.f32 %v1316_v46, %v1041_v10  ;;  %v1042_v22 = vadd.f32 %v978_v42, %v703_v54  ;;  %1443 = vst [vmem:[#allocation7 + $0x198] sm:$0xff] %v1379_v26  ;;  %v980_v0 = vmul.f32 %v1678_v61, %v3090_v16  ;;  %v1319_v24 = vmul.f32 %v1679_v11, %v3216_v47  ;;  %v1691_v42 = vld [vmem:[#allocation6 + $0x7d0] sm:$0xff]  ;;  %v1694_v26 = vld [vmem:[#allocation6 + $0x5d8] sm:$0xff]  ;;  %v1699_v11 = vld [vmem:[#allocation6 + $0x7e0] sm:$0xff] }
 0x13a   :  { %v303_v51 = vmul.f32 %v1680_v25, %v3680_v18  ;;  %v642_v27 = vmul.f32 %v1681_v32, %v2438_v60  ;;  %v1043_v2 = vadd.f32 %v979_v12, %v704_v21  ;;  %v705_v23 = vadd.f32 %v641_v8, %v302_v34  ;;  %v1695_v12 = vld [vmem:[#allocation6 + $0x7d8] sm:$0xff]  ;;  %v1697_v34 = vld [vmem:[#allocation6 + $0x3e0] sm:$0xff]  ;;  %v1700_v25 = vld [vmem:[#allocation6 + $0x1e8] sm:$0xff] }
 0x13b   :  { %1444 = vst [vmem:[#allocation7 + $0x1a0] sm:$0xff] %v1380_v15  ;;  %v1381_v31 = vadd.f32 %v1317_v13, %v1042_v22  ;;  %v981_v19 = vmul.f32 %v1682_v20, %v2650_v45  ;;  %v1320_v33 = vmul.f32 %v1683_v44, %v2795_v57  ;;  %v304_v62 = vmul.f32 %v1684_v50, %v2873_v14  ;;  %v1692_v13 = vld [vmem:[#allocation6 + $0x1d8] sm:$0xff]  ;;  %v1698_v8 = vld [vmem:[#allocation6 + $0x5e0] sm:$0xff]  ;;  %v1701_v32 = vld [vmem:[#allocation6 + $0x3e8] sm:$0xff] }
 0x13c   :  { %v706_v36 = vadd.f32 %v642_v27, %v303_v51  ;;  %v643_v7 = vmul.f32 %v1685_v4, %v2974_v39  ;;  %v1382_v29 = vadd.f32 %v1318_v53, %v1043_v2  ;;  %v1044_v41 = vadd.f32 %v980_v0, %v705_v23  ;;  %v1696_v53 = vld [vmem:[#allocation6 + $0x1e0] sm:$0xff]  ;;  %v1702_v23 = vld [vmem:[#allocation6 + $0x5e8] sm:$0xff]  ;;  %v1704_v50 = vld [vmem:[#allocation6 + $0x1f0] sm:$0xff] }
 0x13d   :  { %1445 = vst [vmem:[#allocation7 + $0x1a8] sm:$0xff] %v1381_v31  ;;  %v982_v38 = vmul.f32 %v1686_v5, %v3090_v16  ;;  %v1321_v37 = vmul.f32 %v1687_v48, %v3216_v47  ;;  %v305_v55 = vmul.f32 %v1688_v1, %v3680_v18  ;;  %v644_v6 = vmul.f32 %v1689_v59, %v2438_v60  ;;  %v1705_v4 = vld [vmem:[#allocation6 + $0x3f0] sm:$0xff]  ;;  %v1709_v59 = vld [vmem:[#allocation6 + $0x3f8] sm:$0xff] }
 0x13e   :  { %v1045_v56 = vadd.f32 %v981_v19, %v706_v36  ;;  %v707_v46 = vadd.f32 %v643_v7, %v304_v62  ;;  %1446 = vst [vmem:[#allocation7 + $0x1b0] sm:$0xff] %v1382_v29  ;;  %v1383_v63 = vadd.f32 %v1319_v24, %v1044_v41  ;;  %v983_v35 = vmul.f32 %v1690_v52, %v2650_v45  ;;  %v1703_v19 = vld [vmem:[#allocation6 + $0x7e8] sm:$0xff]  ;;  %v1706_v41 = vld [vmem:[#allocation6 + $0x5f0] sm:$0xff] }
 0x13f   :  { %v1322_v17 = vmul.f32 %v1691_v42, %v2795_v57  ;;  %v306_v10 = vmul.f32 %v1692_v13, %v2873_v14  ;;  %v708_v30 = vadd.f32 %v644_v6, %v305_v55  ;;  %v645_v28 = vmul.f32 %v1693_v3, %v2974_v39  ;;  %v1710_v6 = vld [vmem:[#allocation6 + $0x5f8] sm:$0xff] }
 0x140   :  { %v1384_v54 = vadd.f32 %v1320_v33, %v1045_v56  ;;  %v1046_v9 = vadd.f32 %v982_v38, %v707_v46  ;;  %1447 = vst [vmem:[#allocation7 + $0x1b8] sm:$0xff] %v1383_v63  ;;  %v984_v40 = vmul.f32 %v1694_v26, %v3090_v16  ;;  %v1323_v43 = vmul.f32 %v1695_v12, %v3216_v47  ;;  %v1707_v38 = vld [vmem:[#allocation6 + $0x7f0] sm:$0xff] }
 0x141   :  { %v307_v49 = vmul.f32 %v1696_v53, %v3680_v18  ;;  %v646_v15 = vmul.f32 %v1697_v34, %v2438_v60  ;;  %v1047_v21 = vadd.f32 %v983_v35, %v708_v30  ;;  %v709_v58 = vadd.f32 %v645_v28, %v306_v10  ;;  %v1711_v35 = vld [vmem:[#allocation6 + $0x7f8] sm:$0xff] }
 0x142   :  { %1448 = vst [vmem:[#allocation7 + $0x1c0] sm:$0xff] %v1384_v54  ;;  %v1385_v22 = vadd.f32 %v1321_v37, %v1046_v9  ;;  %v985_v61 = vmul.f32 %v1698_v8, %v2650_v45  ;;  %v1324_v24 = vmul.f32 %v1699_v11, %v2795_v57  ;;  %v308_v51 = vmul.f32 %v1700_v25, %v2873_v14  ;;  %v1708_v37 = vld [vmem:[#allocation6 + $0x1f8] sm:$0xff] }
 0x143   :  { %v710_v0 = vadd.f32 %v646_v15, %v307_v49  ;;  %v647_v27 = vmul.f32 %v1701_v32, %v2974_v39  ;;  %v1386_v31 = vadd.f32 %v1322_v17, %v1047_v21  ;;  %v1048_v2 = vadd.f32 %v984_v40, %v709_v58 }
 0x144   :  { %1449 = vst [vmem:[#allocation7 + $0x1c8] sm:$0xff] %v1385_v22  ;;  %v986_v20 = vmul.f32 %v1702_v23, %v3090_v16  ;;  %v1325_v36 = vmul.f32 %v1703_v19, %v3216_v47  ;;  %v309_v62 = vmul.f32 %v1704_v50, %v3680_v18  ;;  %v648_v7 = vmul.f32 %v1705_v4, %v2438_v60 }
 0x145   :  { %v1049_v44 = vadd.f32 %v985_v61, %v710_v0  ;;  %v711_v33 = vadd.f32 %v647_v27, %v308_v51  ;;  %1450 = vst [vmem:[#allocation7 + $0x1d0] sm:$0xff] %v1386_v31  ;;  %v1387_v29 = vadd.f32 %v1323_v43, %v1048_v2  ;;  %v987_v5 = vmul.f32 %v1706_v41, %v2650_v45 }
 0x146   :  { %v1326_v48 = vmul.f32 %v1707_v38, %v2795_v57  ;;  %v310_v56 = vmul.f32 %v1708_v37, %v2873_v14  ;;  %v712_v55 = vadd.f32 %v648_v7, %v309_v62  ;;  %v649_v18 = vmul.f32 %v1709_v59, %v2974_v39 }
 0x147   :  { %v1388_v46 = vadd.f32 %v1324_v24, %v1049_v44  ;;  %v1050_v1 = vadd.f32 %v986_v20, %v711_v33  ;;  %1451 = vst [vmem:[#allocation7 + $0x1d8] sm:$0xff] %v1387_v29  ;;  %v988_v60 = vmul.f32 %v1710_v6, %v3090_v16  ;;  %v1327_v57 = vmul.f32 %v1711_v35, %v3216_v47 }
 0x148   :  { %v1051_v52 = vadd.f32 %v987_v5, %v712_v55  ;;  %v713_v45 = vadd.f32 %v649_v18, %v310_v56 }
 0x149   :  { %1452 = vst [vmem:[#allocation7 + $0x1e0] sm:$0xff] %v1388_v46  ;;  %v1389_v63 = vadd.f32 %v1325_v36, %v1050_v1 }
 0x14a   :  { %v1390_v14 = vadd.f32 %v1326_v48, %v1051_v52  ;;  %v1052_v42 = vadd.f32 %v988_v60, %v713_v45 }
 0x14b   :  { %1453 = vst [vmem:[#allocation7 + $0x1e8] sm:$0xff] %v1389_v63 }
 0x14c   :  { %1454 = vst [vmem:[#allocation7 + $0x1f0] sm:$0xff] %v1390_v14  ;;  %v1391_v17 = vadd.f32 %v1327_v57, %v1052_v42 }
 0x14e   :  { %1455 = vst [vmem:[#allocation7 + $0x1f8] sm:$0xff] %v1391_v17 }
 0x14f   :  { %1751 = shalt.err (!%p1748_p9)
}
 0x150   :  { %1467 = dma.vmem_to_hbm [thread:$0]  %s1462_s22, 8192, %s3380_s2, [#allocation4], %s1768_s15, %s1768_s15, %s1769_s16  }
 0x151   :  { %1764 = dma.done.wait [#allocation4], 8192  }
 0x152   :  { %1765 = vsyncadd [#allocation4], 4294959104 }
 0x153   :  { %1471 = vsyncpa [#allocation3], 1 }
 0x154   :  { %1472 = vsyncpa [#allocation4], 1 }
 0x155   :  { %1473 = vsyncpa [#allocation5], 1 }

</bundles_post_ra>
